<compile_context>
chip_gen: v7x
topology: tpu7x:2x2x1
jax: 0.10.0
libtpu: 0.0.40
codegen_flags: <defaults>
</compile_context>

<pallas_src>
import functools
import math

import jax
import jax.numpy as jnp
from jax.experimental import pallas as pl
from jax.experimental.pallas import tpu as pltpu

EPS = 1e-5

H1 = 128          # layer1 width
H2 = 256          # layer2 width
OUT = 784         # output features (28*28) — written unpadded
VEC_ROWS = 8      # packed small-parameter rows (f32 sublane-tile aligned)
MAX_TB = 1024     # max batch-tile rows for the layer-3 matmul / writeback


def _cdiv(a, b):
    return -(-a // b)


def _round_up(a, m):
    return _cdiv(a, m) * m


def _batch_stats(a, n_valid):
    """One-pass (sum, sum-of-squares) mean / biased variance over the first
    `n_valid` rows of `a` ([rows, feat] f32).  `n_valid` is a trace-time int."""
    n_rows = a.shape[0]
    if n_valid != n_rows:
        # Padded batch: exclude pad rows from the statistics.
        mask = jax.lax.broadcasted_iota(jnp.int32, a.shape, 0) < n_valid
        a = jnp.where(mask, a, 0.0)
    inv_n = 1.0 / float(n_valid)
    mu = jnp.sum(a, axis=0, keepdims=True) * inv_n
    msq = jnp.sum(a * a, axis=0, keepdims=True) * inv_n
    var = jnp.maximum(msq - mu * mu, 0.0)
    return mu, var


def _generator_kernel(x_ref, w1_ref, w2_ref, w3_ref, vec_ref, o_ref, h2_ref,
                      *, n_valid):
    """Fused Generator forward.

    Grid axis 0 tiles the (padded) batch for the final, largest matmul and
    the output writeback.  Layers 1-2 plus whole-batch training-mode BN run
    once on grid step 0 and are stashed (bf16) in the persistent VMEM scratch
    `h2_ref`, so BN sees the full batch.  The grid axis is therefore
    sequential ("arbitrary").
    """
    tb = o_ref.shape[0]

    @pl.when(pl.program_id(0) == 0)
    def _():
        x = x_ref[...]                                            # (Bp, Z) f32

        # ---- layer1: Linear(z_dim, 128)  (bf16 MXU, f32 accumulate) ----
        a1 = jnp.dot(x.astype(jnp.bfloat16), w1_ref[...],
                     preferred_element_type=jnp.float32)
        a1 = a1 + vec_ref[0:1, 0:H1]                              # + b1

        # ---- bn1 (training-mode batch stats), folded to one FMA ----
        mu1, var1 = _batch_stats(a1, n_valid)
        scale1 = vec_ref[1:2, 0:H1] * jax.lax.rsqrt(var1 + EPS)   # gamma*rsqrt
        shift1 = vec_ref[2:3, 0:H1] - mu1 * scale1                # beta - mu*s
        h1 = jnp.maximum(a1 * scale1 + shift1, 0.0)               # BN + ReLU

        # ---- layer2: Linear(128, 256) ----
        a2 = jnp.dot(h1.astype(jnp.bfloat16), w2_ref[...],
                     preferred_element_type=jnp.float32)
        a2 = a2 + vec_ref[3:4, 0:H2]                              # + b2

        # ---- bn2, folded ----
        mu2, var2 = _batch_stats(a2, n_valid)
        scale2 = vec_ref[4:5, 0:H2] * jax.lax.rsqrt(var2 + EPS)
        shift2 = vec_ref[5:6, 0:H2] - mu2 * scale2
        h2 = jnp.maximum(a2 * scale2 + shift2, 0.0)               # BN + ReLU

        h2_ref[...] = h2.astype(jnp.bfloat16)                     # bf16 stash

    # ---- layer3: Linear(256, 784), one batch tile per grid step ----
    align = 16 if tb % 16 == 0 else 8       # bf16 sublane tile = 16 rows
    start = pl.multiple_of(pl.program_id(0) * tb, align)
    h2_tile = h2_ref[pl.ds(start, tb), :]                         # bf16 already
    out = jnp.dot(h2_tile, w3_ref[...], preferred_element_type=jnp.float32)
    o_ref[...] = (out + vec_ref[6:7, :]).astype(o_ref.dtype)      # + b3


def pack_generator_params(params):
    """Pack the 10 logical Generator parameters into 4 kernel arrays.

    Returns (w1, w2, w3, vec):
      w1 [z,128] bf16, w2 [128,256] bf16, w3 [256,784] bf16,
      vec [8,784] f32 with rows: b1, g1, be1, b2, g2, be2, b3, 0.
    """
    (w1, b1, g1, be1, w2, b2, g2, be2, w3, b3) = params

    def row(v):
        v = v.reshape(1, -1).astype(jnp.float32)
        return jnp.pad(v, ((0, 0), (0, OUT - v.shape[1])))

    vec = jnp.concatenate(
        [row(b1), row(g1), row(be1),
         row(b2), row(g2), row(be2),
         row(b3), jnp.zeros((1, OUT), jnp.float32)], axis=0)

    return (w1.astype(jnp.bfloat16), w2.astype(jnp.bfloat16),
            w3.astype(jnp.bfloat16), vec)


def generator_forward(x, packed):
    """x: [B, z_dim] float32 -> [B, 28, 28] float32."""
    w1, w2, w3, vec = packed
    B, Z = x.shape

    # Batch tiling: nb tiles of tb rows.  tb is as large as possible
    # (<= MAX_TB) and a multiple of 8 (16 when tiled, for the bf16 scratch
    # slices); awkward B is padded up rather than degrading to tiny tiles.
    nb = _cdiv(B, MAX_TB)
    sub = 8 if nb == 1 else 16
    tb = _round_up(_cdiv(B, nb), sub)
    Bp = nb * tb
    xp = jnp.pad(x, ((0, Bp - B), (0, 0))) if Bp != B else x

    def build(single_buffer):
        def inv_spec(shape):
            # Grid-invariant block: fetched once; single-buffer it if allowed.
            if single_buffer:
                return pl.BlockSpec(shape, lambda i: (0, 0),
                                    pipeline_mode=pl.Buffered(1))
            return pl.BlockSpec(shape, lambda i: (0, 0))

        # Right-sized VMEM request: invariants counted once (or twice on the
        # fallback path), double-buffered output tile, bf16 h2 scratch,
        # plus headroom — clamped against physical VMEM.
        inv_bytes = (Bp * Z * 4 + w1.size * 2 + w2.size * 2 + w3.size * 2
                     + vec.size * 4)
        if not single_buffer:
            inv_bytes *= 2
        vmem_bytes = inv_bytes + 2 * tb * OUT * 4 + Bp * H2 * 2 + (8 << 20)
        try:
            phys = pltpu.get_tpu_info().vmem_capacity_bytes
        except Exception:
            phys = 64 << 20                       # v7x lower bound
        vmem_bytes = min(int(vmem_bytes), int(phys * 0.9))

        return pl.pallas_call(
            functools.partial(_generator_kernel, n_valid=B),
            out_shape=jax.ShapeDtypeStruct((Bp, OUT), jnp.float32),
            grid_spec=pltpu.PrefetchScalarGridSpec(
                num_scalar_prefetch=0,
                grid=(nb,),
                in_specs=[
                    inv_spec((Bp, Z)),                 # x (whole padded batch)
                    inv_spec((Z, H1)),                 # w1
                    inv_spec((H1, H2)),                # w2
                    inv_spec((H2, OUT)),               # w3 (unpadded, 784)
                    inv_spec((VEC_ROWS, OUT)),         # packed vectors
                ],
                out_specs=pl.BlockSpec((tb, OUT), lambda i: (i, 0)),
                scratch_shapes=[pltpu.VMEM((Bp, H2), jnp.bfloat16)],
            ),
            compiler_params=pltpu.CompilerParams(
                # Sequential: every batch tile reads the whole-batch BN result
                # produced on grid step 0 (training-mode BN needs the full
                # batch).  See TODO(synk) about the two-phase v7x variant.
                dimension_semantics=("arbitrary",),
                vmem_limit_bytes=vmem_bytes,
            ),
        )

    try:
        out = build(True)(xp, w1, w2, w3, vec)
    except Exception:
        # pl.Buffered(1) not available on this JAX version — fall back to the
        # default double-buffered pipeline (identical numerics).
        out = build(False)(xp, w1, w2, w3, vec)

    if Bp != B:
        out = out[:B]
    return out.reshape(-1, 28, 28)


def init_generator_params(key, z_dim):
    """Deterministic init matching the module: Linear weights xavier_uniform,
    biases PyTorch-default U(-1/sqrt(fan_in), +), BatchNorm gamma=1 beta=0.
    Linear weights are stored [in, out] (transpose of PyTorch) for y = x@W."""
    keys = jax.random.split(key, 6)

    def xavier(k, fan_in, fan_out):
        bound = math.sqrt(6.0 / (fan_in + fan_out))
        return jax.random.uniform(k, (fan_in, fan_out), jnp.float32, -bound, bound)

    def bias(k, fan_in, fan_out):
        bound = 1.0 / math.sqrt(fan_in)
        return jax.random.uniform(k, (1, fan_out), jnp.float32, -bound, bound)

    w1 = xavier(keys[0], z_dim, 128)
    b1 = bias(keys[1], z_dim, 128)
    w2 = xavier(keys[2], 128, 256)
    b2 = bias(keys[3], 128, 256)
    w3 = xavier(keys[4], 256, 784)
    b3 = bias(keys[5], 256, 784)

    g1 = jnp.ones((1, 128), jnp.float32)
    be1 = jnp.zeros((1, 128), jnp.float32)
    g2 = jnp.ones((1, 256), jnp.float32)
    be2 = jnp.zeros((1, 256), jnp.float32)

    return (w1, b1, g1, be1, w2, b2, g2, be2, w3, b3)


def generator_reference(x, packed):
    """Pure-JAX reference using the same packed params / bf16 matmul inputs."""
    w1, w2, w3, vec = packed
    b1, g1, be1 = vec[0:1, :H1], vec[1:2, :H1], vec[2:3, :H1]
    b2, g2, be2 = vec[3:4, :H2], vec[4:5, :H2], vec[5:6, :H2]
    b3 = vec[6:7, :]

    def bn(h, g, be):
        mu = jnp.mean(h, axis=0, keepdims=True)
        var = jnp.mean((h - mu) ** 2, axis=0, keepdims=True)
        return (h - mu) * jax.lax.rsqrt(var + EPS) * g + be

    a1 = jnp.dot(x.astype(jnp.bfloat16), w1, preferred_element_type=jnp.float32) + b1
    h1 = jax.nn.relu(bn(a1, g1, be1))
    a2 = jnp.dot(h1.astype(jnp.bfloat16), w2, preferred_element_type=jnp.float32) + b2
    h2 = jax.nn.relu(bn(a2, g2, be2))
    out = jnp.dot(h2.astype(jnp.bfloat16), w3, preferred_element_type=jnp.float32) + b3
    return out.reshape(-1, 28, 28)


if __name__ == "__main__":
    key = jax.random.PRNGKey(0)
    k_param, k_x = jax.random.split(key)

    Z_DIM = 64
    params = init_generator_params(k_param, Z_DIM)
    packed = pack_generator_params(params)

    # Primary small test: batch of 8 latent vectors.
    x = jax.random.normal(k_x, (8, Z_DIM), jnp.float32)
    out = generator_forward(x, packed)
    out = jax.block_until_ready(out)
    ref = generator_reference(x, packed)
    assert out.shape == (8, 28, 28)
    assert jnp.allclose(out, ref, atol=1e-2, rtol=1e-2), "mismatch vs reference (B=8)"

    # Awkward batch (not a multiple of 8): padded internally, BN stats stay exact.
    x10 = jax.random.normal(jax.random.PRNGKey(1), (10, Z_DIM), jnp.float32)
    out10 = jax.block_until_ready(generator_forward(x10, packed))
    ref10 = generator_reference(x10, packed)
    assert out10.shape == (10, 28, 28)
    assert jnp.allclose(out10, ref10, atol=1e-2, rtol=1e-2), "mismatch (B=10)"

    # Multi-tile batch (> MAX_TB): exercises the tiled layer-3 / scratch path.
    x_big = jax.random.normal(jax.random.PRNGKey(2), (1056, Z_DIM), jnp.float32)
    out_big = jax.block_until_ready(generator_forward(x_big, packed))
    ref_big = generator_reference(x_big, packed)
    assert out_big.shape == (1056, 28, 28)
    assert jnp.allclose(out_big, ref_big, atol=1e-2, rtol=1e-2), "mismatch (B=1056)"

    print("KERNEL_OK")
</pallas_src>

<mosaic_0001>
module attributes {stable_mosaic.version = 11 : i64} {
  func.func @_generator_kernel(%arg0: i32, %arg1: memref<8x64xf32, #tpu.memory_space<vmem>>, %arg2: memref<64x128xbf16, #tpu.memory_space<vmem>>, %arg3: memref<128x256xbf16, #tpu.memory_space<vmem>>, %arg4: memref<256x784xbf16, #tpu.memory_space<vmem>>, %arg5: memref<8x784xf32, #tpu.memory_space<vmem>>, %arg6: memref<8x784xf32, #tpu.memory_space<vmem>>, %arg7: memref<8x256xbf16, #tpu.memory_space<vmem>>) attributes {dimension_semantics = [#tpu.dimension_semantics<arbitrary>], iteration_bounds = array<i64: 1>, scalar_prefetch = 0 : i64, scratch_operands = 1 : i64, tpu.core_type = #tpu.core_type<tc>, window_params = [{pipeline_mode = #tpu.pipeline_mode<synchronous>, transform_indices = @transform_0, window_bounds = array<i64: 8, 64>}, {pipeline_mode = #tpu.pipeline_mode<synchronous>, transform_indices = @transform_1, window_bounds = array<i64: 64, 128>}, {pipeline_mode = #tpu.pipeline_mode<synchronous>, transform_indices = @transform_2, window_bounds = array<i64: 128, 256>}, {pipeline_mode = #tpu.pipeline_mode<synchronous>, transform_indices = @transform_3, window_bounds = array<i64: 256, 784>}, {pipeline_mode = #tpu.pipeline_mode<synchronous>, transform_indices = @transform_4, window_bounds = array<i64: 8, 784>}, {transform_indices = @transform_5, window_bounds = array<i64: 8, 784>}]} {
    %c0_i32 = arith.constant 0 : i32
    %0 = arith.cmpi eq, %arg0, %c0_i32 : i32
    %1 = arith.extui %0 : i1 to i32
    %c0_i32_0 = arith.constant 0 : i32
    %2 = arith.cmpi ne, %1, %c0_i32_0 : i32
    scf.if %2 {
      %c0_6 = arith.constant 0 : index
      %c0_7 = arith.constant 0 : index
      %13 = vector.load %arg1[%c0_6, %c0_7] : memref<8x64xf32, #tpu.memory_space<vmem>>, vector<8x64xf32>
      %14 = arith.truncf %13 : vector<8x64xf32> to vector<8x64xbf16>
      %c0_8 = arith.constant 0 : index
      %c0_9 = arith.constant 0 : index
      %15 = vector.load %arg2[%c0_8, %c0_9] : memref<64x128xbf16, #tpu.memory_space<vmem>>, vector<64x128xbf16>
      %cst_10 = arith.constant dense<0.000000e+00> : vector<8x128xf32>
      %16 = tpu.matmul %14, %15, %cst_10 {dimension_numbers = #tpu.dot_dimension_numbers<[1], [0], [0], [1], [0, 0, 1, 1], [], []>} : vector<8x64xbf16>, vector<64x128xbf16>, vector<8x128xf32> -> vector<8x128xf32>
      %c0_11 = arith.constant 0 : index
      %c0_12 = arith.constant 0 : index
      %17 = vector.load %arg5[%c0_11, %c0_12] : memref<8x784xf32, #tpu.memory_space<vmem>>, vector<1x128xf32>
      %18 = vector.broadcast %17 : vector<1x128xf32> to vector<8x128xf32>
      %19 = arith.addf %16, %18 : vector<8x128xf32>
      %cst_13 = arith.constant dense<0.000000e+00> : vector<128xf32>
      %20 = vector.multi_reduction <add>, %19, %cst_13 [0] : vector<8x128xf32> to vector<128xf32>
      %21 = vector.shape_cast %20 : vector<128xf32> to vector<1x128xf32>
      %cst_14 = arith.constant 1.250000e-01 : f32
      %22 = vector.broadcast %cst_14 : f32 to vector<1x128xf32>
      %23 = arith.mulf %21, %22 : vector<1x128xf32>
      %24 = arith.mulf %19, %19 : vector<8x128xf32>
      %cst_15 = arith.constant dense<0.000000e+00> : vector<128xf32>
      %25 = vector.multi_reduction <add>, %24, %cst_15 [0] : vector<8x128xf32> to vector<128xf32>
      %26 = vector.shape_cast %25 : vector<128xf32> to vector<1x128xf32>
      %cst_16 = arith.constant 1.250000e-01 : f32
      %27 = vector.broadcast %cst_16 : f32 to vector<1x128xf32>
      %28 = arith.mulf %26, %27 : vector<1x128xf32>
      %29 = arith.mulf %23, %23 : vector<1x128xf32>
      %30 = arith.subf %28, %29 : vector<1x128xf32>
      %cst_17 = arith.constant 0.000000e+00 : f32
      %31 = vector.broadcast %cst_17 : f32 to vector<1x128xf32>
      %32 = arith.maximumf %30, %31 : vector<1x128xf32>
      %c1 = arith.constant 1 : index
      %c0_18 = arith.constant 0 : index
      %33 = vector.load %arg5[%c1, %c0_18] : memref<8x784xf32, #tpu.memory_space<vmem>>, vector<1x128xf32>
      %cst_19 = arith.constant 9.99999974E-6 : f32
      %34 = vector.broadcast %cst_19 : f32 to vector<1x128xf32>
      %35 = arith.addf %32, %34 : vector<1x128xf32>
      %36 = math.rsqrt %35 : vector<1x128xf32>
      %37 = arith.mulf %33, %36 : vector<1x128xf32>
      %c2 = arith.constant 2 : index
      %c0_20 = arith.constant 0 : index
      %38 = vector.load %arg5[%c2, %c0_20] : memref<8x784xf32, #tpu.memory_space<vmem>>, vector<1x128xf32>
      %39 = arith.mulf %23, %37 : vector<1x128xf32>
      %40 = arith.subf %38, %39 : vector<1x128xf32>
      %41 = vector.broadcast %37 : vector<1x128xf32> to vector<8x128xf32>
      %42 = arith.mulf %19, %41 : vector<8x128xf32>
      %43 = vector.broadcast %40 : vector<1x128xf32> to vector<8x128xf32>
      %44 = arith.addf %42, %43 : vector<8x128xf32>
      %cst_21 = arith.constant 0.000000e+00 : f32
      %45 = vector.broadcast %cst_21 : f32 to vector<8x128xf32>
      %46 = arith.maximumf %44, %45 : vector<8x128xf32>
      %47 = arith.truncf %46 : vector<8x128xf32> to vector<8x128xbf16>
      %c0_22 = arith.constant 0 : index
      %c0_23 = arith.constant 0 : index
      %48 = vector.load %arg3[%c0_22, %c0_23] : memref<128x256xbf16, #tpu.memory_space<vmem>>, vector<128x256xbf16>
      %cst_24 = arith.constant dense<0.000000e+00> : vector<8x256xf32>
      %49 = tpu.matmul %47, %48, %cst_24 {dimension_numbers = #tpu.dot_dimension_numbers<[1], [0], [0], [1], [0, 0, 1, 1], [], []>} : vector<8x128xbf16>, vector<128x256xbf16>, vector<8x256xf32> -> vector<8x256xf32>
      %c3 = arith.constant 3 : index
      %c0_25 = arith.constant 0 : index
      %50 = vector.load %arg5[%c3, %c0_25] : memref<8x784xf32, #tpu.memory_space<vmem>>, vector<1x256xf32>
      %51 = vector.broadcast %50 : vector<1x256xf32> to vector<8x256xf32>
      %52 = arith.addf %49, %51 : vector<8x256xf32>
      %cst_26 = arith.constant dense<0.000000e+00> : vector<256xf32>
      %53 = vector.multi_reduction <add>, %52, %cst_26 [0] : vector<8x256xf32> to vector<256xf32>
      %54 = vector.shape_cast %53 : vector<256xf32> to vector<1x256xf32>
      %cst_27 = arith.constant 1.250000e-01 : f32
      %55 = vector.broadcast %cst_27 : f32 to vector<1x256xf32>
      %56 = arith.mulf %54, %55 : vector<1x256xf32>
      %57 = arith.mulf %52, %52 : vector<8x256xf32>
      %cst_28 = arith.constant dense<0.000000e+00> : vector<256xf32>
      %58 = vector.multi_reduction <add>, %57, %cst_28 [0] : vector<8x256xf32> to vector<256xf32>
      %59 = vector.shape_cast %58 : vector<256xf32> to vector<1x256xf32>
      %cst_29 = arith.constant 1.250000e-01 : f32
      %60 = vector.broadcast %cst_29 : f32 to vector<1x256xf32>
      %61 = arith.mulf %59, %60 : vector<1x256xf32>
      %62 = arith.mulf %56, %56 : vector<1x256xf32>
      %63 = arith.subf %61, %62 : vector<1x256xf32>
      %cst_30 = arith.constant 0.000000e+00 : f32
      %64 = vector.broadcast %cst_30 : f32 to vector<1x256xf32>
      %65 = arith.maximumf %63, %64 : vector<1x256xf32>
      %c4 = arith.constant 4 : index
      %c0_31 = arith.constant 0 : index
      %66 = vector.load %arg5[%c4, %c0_31] : memref<8x784xf32, #tpu.memory_space<vmem>>, vector<1x256xf32>
      %cst_32 = arith.constant 9.99999974E-6 : f32
      %67 = vector.broadcast %cst_32 : f32 to vector<1x256xf32>
      %68 = arith.addf %65, %67 : vector<1x256xf32>
      %69 = math.rsqrt %68 : vector<1x256xf32>
      %70 = arith.mulf %66, %69 : vector<1x256xf32>
      %c5 = arith.constant 5 : index
      %c0_33 = arith.constant 0 : index
      %71 = vector.load %arg5[%c5, %c0_33] : memref<8x784xf32, #tpu.memory_space<vmem>>, vector<1x256xf32>
      %72 = arith.mulf %56, %70 : vector<1x256xf32>
      %73 = arith.subf %71, %72 : vector<1x256xf32>
      %74 = vector.broadcast %70 : vector<1x256xf32> to vector<8x256xf32>
      %75 = arith.mulf %52, %74 : vector<8x256xf32>
      %76 = vector.broadcast %73 : vector<1x256xf32> to vector<8x256xf32>
      %77 = arith.addf %75, %76 : vector<8x256xf32>
      %cst_34 = arith.constant 0.000000e+00 : f32
      %78 = vector.broadcast %cst_34 : f32 to vector<8x256xf32>
      %79 = arith.maximumf %77, %78 : vector<8x256xf32>
      %80 = arith.truncf %79 : vector<8x256xf32> to vector<8x256xbf16>
      %c0_35 = arith.constant 0 : index
      %c0_36 = arith.constant 0 : index
      %81 = vector.load %arg7[%c0_35, %c0_36] : memref<8x256xbf16, #tpu.memory_space<vmem>>, vector<8x256xbf16>
      tpu.vector_store %arg7[%c0_35, %c0_36], %80 {strides = array<i32>} : memref<8x256xbf16, #tpu.memory_space<vmem>>, vector<8x256xbf16>,
    } else {
    }
    %c8_i32 = arith.constant 8 : i32
    %3 = arith.muli %arg0, %c8_i32 : i32
    %4 = tpu.assume_multiple %3, 8 : i32
    %5 = arith.index_cast %4 : i32 to index
    %c0 = arith.constant 0 : index
    %6 = vector.load %arg7[%5, %c0] : memref<8x256xbf16, #tpu.memory_space<vmem>>, vector<8x256xbf16>
    %c0_1 = arith.constant 0 : index
    %c0_2 = arith.constant 0 : index
    %7 = vector.load %arg4[%c0_1, %c0_2] : memref<256x784xbf16, #tpu.memory_space<vmem>>, vector<256x784xbf16>
    %cst = arith.constant dense<0.000000e+00> : vector<8x784xf32>
    %8 = tpu.matmul %6, %7, %cst {dimension_numbers = #tpu.dot_dimension_numbers<[1], [0], [0], [1], [0, 0, 1, 1], [], []>} : vector<8x256xbf16>, vector<256x784xbf16>, vector<8x784xf32> -> vector<8x784xf32>
    %c6 = arith.constant 6 : index
    %c0_3 = arith.constant 0 : index
    %9 = vector.load %arg5[%c6, %c0_3] : memref<8x784xf32, #tpu.memory_space<vmem>>, vector<1x784xf32>
    %10 = vector.broadcast %9 : vector<1x784xf32> to vector<8x784xf32>
    %11 = arith.addf %8, %10 : vector<8x784xf32>
    %c0_4 = arith.constant 0 : index
    %c0_5 = arith.constant 0 : index
    %12 = vector.load %arg6[%c0_4, %c0_5] : memref<8x784xf32, #tpu.memory_space<vmem>>, vector<8x784xf32>
    tpu.vector_store %arg6[%c0_4, %c0_5], %11 {strides = array<i32>} : memref<8x784xf32, #tpu.memory_space<vmem>>, vector<8x784xf32>,
    return
  }
  func.func @transform_0(%arg0: i32) -> (i32, i32) {
    %c0_i32 = arith.constant 0 : i32
    %c0_i32_0 = arith.constant 0 : i32
    %c0_i32_1 = arith.constant 0 : i32
    return %c0_i32, %c0_i32_0 : i32, i32
  }
  func.func @transform_1(%arg0: i32) -> (i32, i32) {
    %c0_i32 = arith.constant 0 : i32
    %c0_i32_0 = arith.constant 0 : i32
    %c0_i32_1 = arith.constant 0 : i32
    return %c0_i32, %c0_i32_0 : i32, i32
  }
  func.func @transform_2(%arg0: i32) -> (i32, i32) {
    %c0_i32 = arith.constant 0 : i32
    %c0_i32_0 = arith.constant 0 : i32
    %c0_i32_1 = arith.constant 0 : i32
    return %c0_i32, %c0_i32_0 : i32, i32
  }
  func.func @transform_3(%arg0: i32) -> (i32, i32) {
    %c0_i32 = arith.constant 0 : i32
    %c0_i32_0 = arith.constant 0 : i32
    %c0_i32_1 = arith.constant 0 : i32
    return %c0_i32, %c0_i32_0 : i32, i32
  }
  func.func @transform_4(%arg0: i32) -> (i32, i32) {
    %c0_i32 = arith.constant 0 : i32
    %c0_i32_0 = arith.constant 0 : i32
    %c0_i32_1 = arith.constant 0 : i32
    return %c0_i32, %c0_i32_0 : i32, i32
  }
  func.func @transform_5(%arg0: i32) -> (i32, i32) {
    %c0_i32 = arith.constant 0 : i32
    %c0_i32_0 = arith.constant 0 : i32
    return %arg0, %c0_i32 : i32, i32
  }
}

module attributes {stable_mosaic.version = 11 : i64} {
  func.func @_generator_kernel(%arg0: i32, %arg1: memref<8x64xf32, #tpu.memory_space<vmem>>, %arg2: memref<64x128xbf16, #tpu.memory_space<vmem>>, %arg3: memref<128x256xbf16, #tpu.memory_space<vmem>>, %arg4: memref<256x784xbf16, #tpu.memory_space<vmem>>, %arg5: memref<8x784xf32, #tpu.memory_space<vmem>>, %arg6: memref<8x784xf32, #tpu.memory_space<vmem>>, %arg7: memref<8x256xbf16, #tpu.memory_space<vmem>>) attributes {dimension_semantics = [#tpu.dimension_semantics<arbitrary>], iteration_bounds = array<i64: 1>, scalar_prefetch = 0 : i64, scratch_operands = 1 : i64, tpu.core_type = #tpu.core_type<tc>, window_params = [{pipeline_mode = #tpu.pipeline_mode<synchronous>, transform_indices = @transform_0, window_bounds = array<i64: 8, 64>}, {pipeline_mode = #tpu.pipeline_mode<synchronous>, transform_indices = @transform_1, window_bounds = array<i64: 64, 128>}, {pipeline_mode = #tpu.pipeline_mode<synchronous>, transform_indices = @transform_2, window_bounds = array<i64: 128, 256>}, {pipeline_mode = #tpu.pipeline_mode<synchronous>, transform_indices = @transform_3, window_bounds = array<i64: 256, 784>}, {pipeline_mode = #tpu.pipeline_mode<synchronous>, transform_indices = @transform_4, window_bounds = array<i64: 8, 784>}, {transform_indices = @transform_5, window_bounds = array<i64: 8, 784>}]} {
    %c0_i32 = arith.constant 0 : i32
    %0 = arith.cmpi eq, %arg0, %c0_i32 : i32
    %1 = arith.extui %0 : i1 to i32
    %c0_i32_0 = arith.constant 0 : i32
    %2 = arith.cmpi ne, %1, %c0_i32_0 : i32
    scf.if %2 {
      %c0_6 = arith.constant 0 : index
      %c0_7 = arith.constant 0 : index
      %13 = vector.load %arg1[%c0_6, %c0_7] : memref<8x64xf32, #tpu.memory_space<vmem>>, vector<8x64xf32>
      %14 = arith.truncf %13 : vector<8x64xf32> to vector<8x64xbf16>
      %c0_8 = arith.constant 0 : index
      %c0_9 = arith.constant 0 : index
      %15 = vector.load %arg2[%c0_8, %c0_9] : memref<64x128xbf16, #tpu.memory_space<vmem>>, vector<64x128xbf16>
      %cst_10 = arith.constant dense<0.000000e+00> : vector<8x128xf32>
      %16 = tpu.matmul %14, %15, %cst_10 {dimension_numbers = #tpu.dot_dimension_numbers<[1], [0], [0], [1], [0, 0, 1, 1], [], []>} : vector<8x64xbf16>, vector<64x128xbf16>, vector<8x128xf32> -> vector<8x128xf32>
      %c0_11 = arith.constant 0 : index
      %c0_12 = arith.constant 0 : index
      %17 = vector.load %arg5[%c0_11, %c0_12] : memref<8x784xf32, #tpu.memory_space<vmem>>, vector<1x128xf32>
      %18 = vector.broadcast %17 : vector<1x128xf32> to vector<8x128xf32>
      %19 = arith.addf %16, %18 : vector<8x128xf32>
      %cst_13 = arith.constant dense<0.000000e+00> : vector<128xf32>
      %20 = vector.multi_reduction <add>, %19, %cst_13 [0] : vector<8x128xf32> to vector<128xf32>
      %21 = vector.shape_cast %20 : vector<128xf32> to vector<1x128xf32>
      %cst_14 = arith.constant 1.250000e-01 : f32
      %22 = vector.broadcast %cst_14 : f32 to vector<1x128xf32>
      %23 = arith.mulf %21, %22 : vector<1x128xf32>
      %24 = arith.mulf %19, %19 : vector<8x128xf32>
      %cst_15 = arith.constant dense<0.000000e+00> : vector<128xf32>
      %25 = vector.multi_reduction <add>, %24, %cst_15 [0] : vector<8x128xf32> to vector<128xf32>
      %26 = vector.shape_cast %25 : vector<128xf32> to vector<1x128xf32>
      %cst_16 = arith.constant 1.250000e-01 : f32
      %27 = vector.broadcast %cst_16 : f32 to vector<1x128xf32>
      %28 = arith.mulf %26, %27 : vector<1x128xf32>
      %29 = arith.mulf %23, %23 : vector<1x128xf32>
      %30 = arith.subf %28, %29 : vector<1x128xf32>
      %cst_17 = arith.constant 0.000000e+00 : f32
      %31 = vector.broadcast %cst_17 : f32 to vector<1x128xf32>
      %32 = arith.maximumf %30, %31 : vector<1x128xf32>
      %c1 = arith.constant 1 : index
      %c0_18 = arith.constant 0 : index
      %33 = vector.load %arg5[%c1, %c0_18] : memref<8x784xf32, #tpu.memory_space<vmem>>, vector<1x128xf32>
      %cst_19 = arith.constant 9.99999974E-6 : f32
      %34 = vector.broadcast %cst_19 : f32 to vector<1x128xf32>
      %35 = arith.addf %32, %34 : vector<1x128xf32>
      %36 = math.rsqrt %35 : vector<1x128xf32>
      %37 = arith.mulf %33, %36 : vector<1x128xf32>
      %c2 = arith.constant 2 : index
      %c0_20 = arith.constant 0 : index
      %38 = vector.load %arg5[%c2, %c0_20] : memref<8x784xf32, #tpu.memory_space<vmem>>, vector<1x128xf32>
      %39 = arith.mulf %23, %37 : vector<1x128xf32>
      %40 = arith.subf %38, %39 : vector<1x128xf32>
      %41 = vector.broadcast %37 : vector<1x128xf32> to vector<8x128xf32>
      %42 = arith.mulf %19, %41 : vector<8x128xf32>
      %43 = vector.broadcast %40 : vector<1x128xf32> to vector<8x128xf32>
      %44 = arith.addf %42, %43 : vector<8x128xf32>
      %cst_21 = arith.constant 0.000000e+00 : f32
      %45 = vector.broadcast %cst_21 : f32 to vector<8x128xf32>
      %46 = arith.maximumf %44, %45 : vector<8x128xf32>
      %47 = arith.truncf %46 : vector<8x128xf32> to vector<8x128xbf16>
      %c0_22 = arith.constant 0 : index
      %c0_23 = arith.constant 0 : index
      %48 = vector.load %arg3[%c0_22, %c0_23] : memref<128x256xbf16, #tpu.memory_space<vmem>>, vector<128x256xbf16>
      %cst_24 = arith.constant dense<0.000000e+00> : vector<8x256xf32>
      %49 = tpu.matmul %47, %48, %cst_24 {dimension_numbers = #tpu.dot_dimension_numbers<[1], [0], [0], [1], [0, 0, 1, 1], [], []>} : vector<8x128xbf16>, vector<128x256xbf16>, vector<8x256xf32> -> vector<8x256xf32>
      %c3 = arith.constant 3 : index
      %c0_25 = arith.constant 0 : index
      %50 = vector.load %arg5[%c3, %c0_25] : memref<8x784xf32, #tpu.memory_space<vmem>>, vector<1x256xf32>
      %51 = vector.broadcast %50 : vector<1x256xf32> to vector<8x256xf32>
      %52 = arith.addf %49, %51 : vector<8x256xf32>
      %cst_26 = arith.constant dense<0.000000e+00> : vector<256xf32>
      %53 = vector.multi_reduction <add>, %52, %cst_26 [0] : vector<8x256xf32> to vector<256xf32>
      %54 = vector.shape_cast %53 : vector<256xf32> to vector<1x256xf32>
      %cst_27 = arith.constant 1.250000e-01 : f32
      %55 = vector.broadcast %cst_27 : f32 to vector<1x256xf32>
      %56 = arith.mulf %54, %55 : vector<1x256xf32>
      %57 = arith.mulf %52, %52 : vector<8x256xf32>
      %cst_28 = arith.constant dense<0.000000e+00> : vector<256xf32>
      %58 = vector.multi_reduction <add>, %57, %cst_28 [0] : vector<8x256xf32> to vector<256xf32>
      %59 = vector.shape_cast %58 : vector<256xf32> to vector<1x256xf32>
      %cst_29 = arith.constant 1.250000e-01 : f32
      %60 = vector.broadcast %cst_29 : f32 to vector<1x256xf32>
      %61 = arith.mulf %59, %60 : vector<1x256xf32>
      %62 = arith.mulf %56, %56 : vector<1x256xf32>
      %63 = arith.subf %61, %62 : vector<1x256xf32>
      %cst_30 = arith.constant 0.000000e+00 : f32
      %64 = vector.broadcast %cst_30 : f32 to vector<1x256xf32>
      %65 = arith.maximumf %63, %64 : vector<1x256xf32>
      %c4 = arith.constant 4 : index
      %c0_31 = arith.constant 0 : index
      %66 = vector.load %arg5[%c4, %c0_31] : memref<8x784xf32, #tpu.memory_space<vmem>>, vector<1x256xf32>
      %cst_32 = arith.constant 9.99999974E-6 : f32
      %67 = vector.broadcast %cst_32 : f32 to vector<1x256xf32>
      %68 = arith.addf %65, %67 : vector<1x256xf32>
      %69 = math.rsqrt %68 : vector<1x256xf32>
      %70 = arith.mulf %66, %69 : vector<1x256xf32>
      %c5 = arith.constant 5 : index
      %c0_33 = arith.constant 0 : index
      %71 = vector.load %arg5[%c5, %c0_33] : memref<8x784xf32, #tpu.memory_space<vmem>>, vector<1x256xf32>
      %72 = arith.mulf %56, %70 : vector<1x256xf32>
      %73 = arith.subf %71, %72 : vector<1x256xf32>
      %74 = vector.broadcast %70 : vector<1x256xf32> to vector<8x256xf32>
      %75 = arith.mulf %52, %74 : vector<8x256xf32>
      %76 = vector.broadcast %73 : vector<1x256xf32> to vector<8x256xf32>
      %77 = arith.addf %75, %76 : vector<8x256xf32>
      %cst_34 = arith.constant 0.000000e+00 : f32
      %78 = vector.broadcast %cst_34 : f32 to vector<8x256xf32>
      %79 = arith.maximumf %77, %78 : vector<8x256xf32>
      %80 = arith.truncf %79 : vector<8x256xf32> to vector<8x256xbf16>
      %c0_35 = arith.constant 0 : index
      %c0_36 = arith.constant 0 : index
      %81 = vector.load %arg7[%c0_35, %c0_36] : memref<8x256xbf16, #tpu.memory_space<vmem>>, vector<8x256xbf16>
      tpu.vector_store %arg7[%c0_35, %c0_36], %80 {strides = array<i32>} : memref<8x256xbf16, #tpu.memory_space<vmem>>, vector<8x256xbf16>,
    } else {
    }
    %c8_i32 = arith.constant 8 : i32
    %3 = arith.muli %arg0, %c8_i32 : i32
    %4 = tpu.assume_multiple %3, 8 : i32
    %5 = arith.index_cast %4 : i32 to index
    %c0 = arith.constant 0 : index
    %6 = vector.load %arg7[%5, %c0] : memref<8x256xbf16, #tpu.memory_space<vmem>>, vector<8x256xbf16>
    %c0_1 = arith.constant 0 : index
    %c0_2 = arith.constant 0 : index
    %7 = vector.load %arg4[%c0_1, %c0_2] : memref<256x784xbf16, #tpu.memory_space<vmem>>, vector<256x784xbf16>
    %cst = arith.constant dense<0.000000e+00> : vector<8x784xf32>
    %8 = tpu.matmul %6, %7, %cst {dimension_numbers = #tpu.dot_dimension_numbers<[1], [0], [0], [1], [0, 0, 1, 1], [], []>} : vector<8x256xbf16>, vector<256x784xbf16>, vector<8x784xf32> -> vector<8x784xf32>
    %c6 = arith.constant 6 : index
    %c0_3 = arith.constant 0 : index
    %9 = vector.load %arg5[%c6, %c0_3] : memref<8x784xf32, #tpu.memory_space<vmem>>, vector<1x784xf32>
    %10 = vector.broadcast %9 : vector<1x784xf32> to vector<8x784xf32>
    %11 = arith.addf %8, %10 : vector<8x784xf32>
    %c0_4 = arith.constant 0 : index
    %c0_5 = arith.constant 0 : index
    %12 = vector.load %arg6[%c0_4, %c0_5] : memref<8x784xf32, #tpu.memory_space<vmem>>, vector<8x784xf32>
    tpu.vector_store %arg6[%c0_4, %c0_5], %11 {strides = array<i32>} : memref<8x784xf32, #tpu.memory_space<vmem>>, vector<8x784xf32>,
    return
  }
  func.func @transform_0(%arg0: i32) -> (i32, i32) {
    %c0_i32 = arith.constant 0 : i32
    %c0_i32_0 = arith.constant 0 : i32
    %c0_i32_1 = arith.constant 0 : i32
    return %c0_i32, %c0_i32_0 : i32, i32
  }
  func.func @transform_1(%arg0: i32) -> (i32, i32) {
    %c0_i32 = arith.constant 0 : i32
    %c0_i32_0 = arith.constant 0 : i32
    %c0_i32_1 = arith.constant 0 : i32
    return %c0_i32, %c0_i32_0 : i32, i32
  }
  func.func @transform_2(%arg0: i32) -> (i32, i32) {
    %c0_i32 = arith.constant 0 : i32
    %c0_i32_0 = arith.constant 0 : i32
    %c0_i32_1 = arith.constant 0 : i32
    return %c0_i32, %c0_i32_0 : i32, i32
  }
  func.func @transform_3(%arg0: i32) -> (i32, i32) {
    %c0_i32 = arith.constant 0 : i32
    %c0_i32_0 = arith.constant 0 : i32
    %c0_i32_1 = arith.constant 0 : i32
    return %c0_i32, %c0_i32_0 : i32, i32
  }
  func.func @transform_4(%arg0: i32) -> (i32, i32) {
    %c0_i32 = arith.constant 0 : i32
    %c0_i32_0 = arith.constant 0 : i32
    %c0_i32_1 = arith.constant 0 : i32
    return %c0_i32, %c0_i32_0 : i32, i32
  }
  func.func @transform_5(%arg0: i32) -> (i32, i32) {
    %c0_i32 = arith.constant 0 : i32
    %c0_i32_0 = arith.constant 0 : i32
    return %arg0, %c0_i32 : i32, i32
  }
}

</mosaic_0001>

<bundles_post_ra>
// kernel: tpu_custom_call.1
= control target key start
LH: loop header
LB: loop body
LE: loop exit
PB: predicated region body
PF: predicated region fallthrough
CT: control target
= control target key end

     0   :  { %v1756_v1 = vmov 0.0   ;;  %vm1757_vm0 = vmmov 0   ;;  %vm61_vm1 = vcmask 523264   ;;  %s2254_s0 = inlined_call_operand.vmem [shape: f32[8,64], index: 0, kind: input, shape index: {}]   ;;  %s2255_s1 = inlined_call_operand.vmem [shape: bf16[64,128], index: 1, kind: input, shape index: {}]   ;;  %s2256_s2 = inlined_call_operand.vmem [shape: bf16[128,256], index: 2, kind: input, shape index: {}]   ;;  %s2257_s3 = inlined_call_operand.vmem [shape: bf16[256,784], index: 3, kind: input, shape index: {}]   ;;  %s2258_s4 = inlined_call_operand.vmem [shape: f32[8,784], index: 4, kind: input, shape index: {}]   ;;  %s2259_s5 = inlined_call_operand.hbm [shape: f32[8,784], index: 5, kind: output, shape index: {}]  }
   0x1   :  { %v1538_v0 = vld [vmem:[%s2255_s1] sm:$0xff]   ;;  %1521 = vmatprep.subr.bf16.mxu0 %v1756_v1  ;;  %v1539_v2 = vld [vmem:[%s2255_s1 + $0x8] sm:$0xff]   ;;  %1529 = vmatprep.mubr.msk.bf16.mxu0 %vm1757_vm0, %v1756_v1  ;;  %v1540_v3 = vld [vmem:[%s2255_s1 + $0x10] sm:$0xff]  }
   0x2   :  { %1522 = vmatpush3.bf16.msra.mxu0 %v1538_v0  ;;  %v1541_v4 = vld [vmem:[%s2255_s1 + $0x18] sm:$0xff]   ;;  %v26_v5 = vld [vmem:[%s2254_s0] sm:$0xff] }
   0x3   :  { %1523 = vmatprep.subr.bf16.mxu0 %v1756_v1  ;;  %v27_v6 = vpack.c.bf16 %v26_v5, %v26_v5 }
   0x6   :  { %1524 = vmatpush3.bf16.msra.mxu0 %v1539_v2 }
   0x7   :  { %1525 = vmatprep.subr.bf16.mxu0 %v1756_v1 }
   0xa   :  { %1526 = vmatpush3.bf16.msra.mxu0 %v1540_v3 }
   0xb   :  { %1527 = vmatprep.subr.bf16.mxu0 %v1756_v1 }
   0xe   :  { %1528 = vmatpush3.bf16.msra.mxu0 %v1541_v4 }
  0x11   :  { %1530 = vmatmul.mubr.msk.bf16.vlgmr.msra.gmra.mrb[0].mxu0 %vm61_vm1, %v27_v6 }
  0x12   :  { %10 = vsyncpa [#allocation4], 0  ;;  %v1542_v7 = vld [vmem:[%s2256_s2 + $0x4] ss:$8 sps:$4 sm:$0xff]   ;;  %v1544_v8 = vld [vmem:[%s2256_s2] ss:$8 sps:$4 sm:$0xff]  }
  0x13   :  { %243 = vmatprep.subr.bf16.mxu1 %v1542_v7  ;;  %v1545_v9 = vld [vmem:[%s2256_s2 + $0x14] ss:$8 sps:$4 sm:$0xff]   ;;  %v1547_v10 = vld [vmem:[%s2256_s2 + $0x10] ss:$8 sps:$4 sm:$0xff]   ;;  %v1548_v11 = vld [vmem:[%s2256_s2 + $0x24] ss:$8 sps:$4 sm:$0xff]  }
  0x14   :  { %244 = vmatpush1.bf16.msra.mxu1 %v1544_v8  ;;  %v1550_v12 = vld [vmem:[%s2256_s2 + $0x20] ss:$8 sps:$4 sm:$0xff]   ;;  %v1551_v13 = vld [vmem:[%s2256_s2 + $0x34] ss:$8 sps:$4 sm:$0xff]   ;;  %v1758_v14 = vmov 0   ;;  %vm1332_vm2 = vcmask 130048  }
  0x15   :  { %245 = vmatprep.subr.bf16.mxu1 %v1545_v9  ;;  %275 = vmatprep.mubr.bf16.mxu1 %v1758_v14  ;;  %v1553_v15 = vld [vmem:[%s2256_s2 + $0x30] ss:$8 sps:$4 sm:$0xff]   ;;  %v1554_v16 = vld [vmem:[%s2256_s2 + $0x44] ss:$8 sps:$4 sm:$0xff]   ;;  %v1556_v17 = vld [vmem:[%s2256_s2 + $0x40] ss:$8 sps:$4 sm:$0xff]  }
  0x16   :  { %v1557_v18 = vld [vmem:[%s2256_s2 + $0x54] ss:$8 sps:$4 sm:$0xff]   ;;  %v1559_v19 = vld [vmem:[%s2256_s2 + $0x50] ss:$8 sps:$4 sm:$0xff]   ;;  %v1560_v20 = vld [vmem:[%s2256_s2 + $0x64] ss:$8 sps:$4 sm:$0xff]  }
  0x17   :  { %v1562_v21 = vld [vmem:[%s2256_s2 + $0x60] ss:$8 sps:$4 sm:$0xff]   ;;  %v1563_v22 = vld [vmem:[%s2256_s2 + $0x74] ss:$8 sps:$4 sm:$0xff]   ;;  %v1565_v23 = vld [vmem:[%s2256_s2 + $0x70] ss:$8 sps:$4 sm:$0xff]  }
  0x18   :  { %246 = vmatpush1.bf16.msra.mxu1 %v1547_v10  ;;  %v36_v24 = vld [vmem:[%s2258_s4] ss:$0 sm:$0xff]  ;;  %v123_v49 = vld [vmem:[%s2258_s4 + $0x1] ss:$0 sm:$0xff]  ;;  %v127_v52 = vld [vmem:[%s2258_s4 + $0x2] ss:$0 sm:$0xff] }
  0x19   :  { %247 = vmatprep.subr.bf16.mxu1 %v1548_v11  ;;  %v1568_v59 = vld [vmem:[%s2257_s3 + $0x4] ss:$28 sps:$4 sm:$0xff]   ;;  %v1571_v60 = vld [vmem:[%s2257_s3 + $0xc] ss:$28 sps:$4 sm:$0xff]   ;;  %v1574_v63 = vld [vmem:[%s2257_s3 + $0x3c] ss:$28 sps:$4 sm:$0xff]  }
  0x1a   :  { %v1566_v61 = vld [vmem:[%s2257_s3] ss:$28 sps:$4 sm:$0xff]   ;;  %v1569_v62 = vld [vmem:[%s2257_s3 + $0x8] ss:$28 sps:$4 sm:$0xff]   ;;  %1163 = vmatprep.subr.bf16.mxu0 %v1568_v59  ;;  %v1572_v1 = vld [vmem:[%s2257_s3 + $0x38] ss:$28 sps:$4 sm:$0xff]  }
  0x1b   :  { %1164 = vmatpush1.bf16.msra.mxu0 %v1566_v61  ;;  %v1577_v0 = vld [vmem:[%s2257_s3 + $0x44] ss:$28 sps:$4 sm:$0xff]   ;;  %v1580_v3 = vld [vmem:[%s2257_s3 + $0x74] ss:$28 sps:$4 sm:$0xff]   ;;  %v1583_v4 = vld [vmem:[%s2257_s3 + $0x7c] ss:$28 sps:$4 sm:$0xff]   ;;  %v153_v61 = vlaneseq }
  0x1c   :  { %248 = vmatpush1.bf16.msra.mxu1 %v1550_v12  ;;  %v1575_v2 = vld [vmem:[%s2257_s3 + $0x40] ss:$28 sps:$4 sm:$0xff]   ;;  %1165 = vmatprep.subr.bf16.mxu0 %v1574_v63  ;;  %v1578_v5 = vld [vmem:[%s2257_s3 + $0x70] ss:$28 sps:$4 sm:$0xff]   ;;  %v1581_v6 = vld [vmem:[%s2257_s3 + $0x78] ss:$28 sps:$4 sm:$0xff]  }
  0x1d   :  { %249 = vmatprep.subr.bf16.mxu1 %v1551_v13  ;;  %v1586_v7 = vld [vmem:[%s2257_s3 + $0xac] ss:$28 sps:$4 sm:$0xff]   ;;  %v1589_v8 = vld [vmem:[%s2257_s3 + $0xb4] ss:$28 sps:$4 sm:$0xff]   ;;  %v1592_v11 = vld [vmem:[%s2257_s3 + $0xe4] ss:$28 sps:$4 sm:$0xff]  }
  0x1e   :  { %v1584_v9 = vld [vmem:[%s2257_s3 + $0xa8] ss:$28 sps:$4 sm:$0xff]   ;;  %v1587_v10 = vld [vmem:[%s2257_s3 + $0xb0] ss:$28 sps:$4 sm:$0xff]   ;;  %v1590_v13 = vld [vmem:[%s2257_s3 + $0xe0] ss:$28 sps:$4 sm:$0xff]  }
  0x1f   :  { %1166 = vmatpush1.bf16.msra.mxu0 %v1572_v1  ;;  %v1595_v12 = vld [vmem:[%s2257_s3 + $0xec] ss:$28 sps:$4 sm:$0xff]   ;;  %v1664_v59 = vld [vmem:[%s2257_s3 + $0x14] ss:$28 sps:$4 sm:$0xff]  }
  0x20   :  { %250 = vmatpush1.bf16.msra.mxu1 %v1553_v15  ;;  %1167 = vmatprep.subr.bf16.mxu0 %v1580_v3  ;;  %v1593_v14 = vld [vmem:[%s2257_s3 + $0xe8] ss:$28 sps:$4 sm:$0xff]   ;;  %v1598_v15 = vld [vmem:[%s2257_s3 + $0x11c] ss:$28 sps:$4 sm:$0xff]  }
  0x21   :  { %251 = vmatprep.subr.bf16.mxu1 %v1554_v16  ;;  %v1601_v16 = vld [vmem:[%s2257_s3 + $0x124] ss:$28 sps:$4 sm:$0xff]  }
  0x23   :  { %1168 = vmatpush1.bf16.msra.mxu0 %v1578_v5 }
  0x24   :  { %252 = vmatpush1.bf16.msra.mxu1 %v1556_v17  ;;  %1169 = vmatprep.subr.bf16.mxu0 %v1586_v7  ;;  %v1596_v17 = vld [vmem:[%s2257_s3 + $0x118] ss:$28 sps:$4 sm:$0xff]  }
  0x25   :  { %253 = vmatprep.subr.bf16.mxu1 %v1557_v18  ;;  %v1599_v18 = vld [vmem:[%s2257_s3 + $0x120] ss:$28 sps:$4 sm:$0xff]  }
  0x27   :  { %1170 = vmatpush1.bf16.msra.mxu0 %v1584_v9 }
  0x28   :  { %254 = vmatpush1.bf16.msra.mxu1 %v1559_v19  ;;  %1171 = vmatprep.subr.bf16.mxu0 %v1592_v11  ;;  %v1604_v19 = vld [vmem:[%s2257_s3 + $0x154] ss:$28 sps:$4 sm:$0xff]  }
  0x29   :  { %255 = vmatprep.subr.bf16.mxu1 %v1560_v20  ;;  %v1607_v20 = vld [vmem:[%s2257_s3 + $0x15c] ss:$28 sps:$4 sm:$0xff]  }
  0x2b   :  { %1172 = vmatpush1.bf16.msra.mxu0 %v1590_v13 }
  0x2c   :  { %256 = vmatpush1.bf16.msra.mxu1 %v1562_v21  ;;  %1173 = vmatprep.subr.bf16.mxu0 %v1598_v15  ;;  %v1602_v21 = vld [vmem:[%s2257_s3 + $0x150] ss:$28 sps:$4 sm:$0xff]  }
  0x2d   :  { %257 = vmatprep.subr.bf16.mxu1 %v1563_v22  ;;  %v1605_v22 = vld [vmem:[%s2257_s3 + $0x158] ss:$28 sps:$4 sm:$0xff]  }
  0x2f   :  { %1174 = vmatpush1.bf16.msra.mxu0 %v1596_v17 }
  0x30   :  { %258 = vmatpush1.bf16.msra.mxu1 %v1565_v23  ;;  %1175 = vmatprep.subr.bf16.mxu0 %v1604_v19  ;;  %v1610_v23 = vld [vmem:[%s2257_s3 + $0x18c] ss:$28 sps:$4 sm:$0xff]  }
  0x31   :  { %1204 = vmatprep.subr.bf16.mxu1 %v1571_v60  ;;  %v1665_v60 = vld [vmem:[%s2257_s3 + $0x1d8] ss:$28 sps:$4 sm:$0xff]  }
  0x33   :  { %1176 = vmatpush1.bf16.msra.mxu0 %v1602_v21 }
  0x34   :  { %1177 = vmatprep.subr.bf16.mxu0 %v1610_v23 }
  0xe4   :  { %v99_v25 = vpop.f32.mrb[0].mxu0 }
  0xe5   :  { %v100_v26 = vadd.f32 %v99_v25, %v36_v24  ;;  %v1531_v27 = vpop.f32.mrb[1].mxu0  ;;  %v1613_v24 = vld [vmem:[%s2257_s3 + $0x194] ss:$28 sps:$4 sm:$0xff]   ;;  %v1608_v25 = vld [vmem:[%s2257_s3 + $0x188] ss:$28 sps:$4 sm:$0xff]  }
  0xe6   :  { %v102_v28 = vpop.f32.mrb[2].mxu0  ;;  %1178 = vmatpush1.bf16.msra.mxu0 %v1608_v25  ;;  %v1616_v27 = vld [vmem:[%s2257_s3 + $0x1c4] ss:$28 sps:$4 sm:$0xff]  }
  0xe7   :  { %v105_v29 = vrot.slane %v100_v26, 4  ;;  %v112_v30 = vmul.f32 %v100_v26, %v100_v26  ;;  %v1532_v31 = vpop.f32.mrb[3].mxu0  ;;  %v1619_v28 = vld [vmem:[%s2257_s3 + $0x1cc] ss:$28 sps:$4 sm:$0xff]   ;;  %1179 = vmatprep.subr.bf16.mxu0 %v1616_v27 }
  0xe8   :  { %v1622_v31 = vld [vmem:[%s2257_s3 + $0x1fc] ss:$28 sps:$4 sm:$0xff]  }
  0xe9   :  { %v106_v32 = vadd.f32 %v105_v29, %v100_v26  ;;  %v113_v33 = vrot.slane %v112_v30, 4  ;;  %v1614_v29 = vld [vmem:[%s2257_s3 + $0x1c0] ss:$28 sps:$4 sm:$0xff]  }
  0xea   :  { %1180 = vmatpush1.bf16.msra.mxu0 %v1614_v29 }
  0xeb   :  { %v107_v34 = vrot.slane %v106_v32, 2  ;;  %v114_v35 = vadd.f32 %v113_v33, %v112_v30  ;;  %v1617_v30 = vld [vmem:[%s2257_s3 + $0x1c8] ss:$28 sps:$4 sm:$0xff]   ;;  %v1620_v33 = vld [vmem:[%s2257_s3 + $0x1f8] ss:$28 sps:$4 sm:$0xff]   ;;  %1181 = vmatprep.subr.bf16.mxu0 %v1622_v31 }
  0xed   :  { %v108_v36 = vadd.f32 %v107_v34, %v106_v32  ;;  %v115_v37 = vrot.slane %v114_v35, 2  ;;  %v1625_v32 = vld [vmem:[%s2257_s3 + $0x204] ss:$28 sps:$4 sm:$0xff]  }
  0xee   :  { %v1623_v34 = vld [vmem:[%s2257_s3 + $0x200] ss:$28 sps:$4 sm:$0xff]   ;;  %1182 = vmatpush1.bf16.msra.mxu0 %v1620_v33 }
  0xef   :  { %v109_v38 = vrot.slane %v108_v36, 1  ;;  %v116_v39 = vadd.f32 %v115_v37, %v114_v35  ;;  %v1628_v35 = vld [vmem:[%s2257_s3 + $0x234] ss:$28 sps:$4 sm:$0xff]  }
  0xf0   :  { %v1626_v37 = vld [vmem:[%s2257_s3 + $0x230] ss:$28 sps:$4 sm:$0xff]   ;;  %1183 = vmatprep.subr.bf16.mxu0 %v1628_v35 }
  0xf1   :  { %v117_v40 = vrot.slane %v116_v39, 1  ;;  %v110_v41 = vadd.f32 %v109_v38, %v108_v36  ;;  %v1631_v36 = vld [vmem:[%s2257_s3 + $0x23c] ss:$28 sps:$4 sm:$0xff]  }
  0xf2   :  { %v1629_v38 = vld [vmem:[%s2257_s3 + $0x238] ss:$28 sps:$4 sm:$0xff]   ;;  %1184 = vmatpush1.bf16.msra.mxu0 %v1626_v37 }
  0xf3   :  { %v118_v42 = vadd.f32 %v117_v40, %v116_v39  ;;  %v111_v43 = vmul.f32 0.125, %v110_v41  ;;  %v1634_v39 = vld [vmem:[%s2257_s3 + $0x26c] ss:$28 sps:$4 sm:$0xff]   ;;  %v1637_v40 = vld [vmem:[%s2257_s3 + $0x274] ss:$28 sps:$4 sm:$0xff]  }
  0xf4   :  { %v1632_v41 = vld [vmem:[%s2257_s3 + $0x268] ss:$28 sps:$4 sm:$0xff]   ;;  %1185 = vmatprep.subr.bf16.mxu0 %v1634_v39 }
  0xf5   :  { %v119_v44 = vmul.f32 0.125, %v118_v42  ;;  %v120_v45 = vmul.f32 %v111_v43, %v111_v43  ;;  %v1635_v42 = vld [vmem:[%s2257_s3 + $0x270] ss:$28 sps:$4 sm:$0xff]  }
  0xf6   :  { %1186 = vmatpush1.bf16.msra.mxu0 %v1632_v41 }
  0xf7   :  { %v121_v46 = vsub.f32 %v119_v44, %v120_v45  ;;  %v1643_v44 = vld [vmem:[%s2257_s3 + $0x2ac] ss:$28 sps:$4 sm:$0xff]   ;;  %v1638_v45 = vld [vmem:[%s2257_s3 + $0x2a0] ss:$28 sps:$4 sm:$0xff]  }
  0xf9   :  { %v122_v47 = vmax.f32 %v121_v46, 0.0  ;;  %v1641_v46 = vld [vmem:[%s2257_s3 + $0x2a8] ss:$28 sps:$4 sm:$0xff]  }
  0xfb   :  { %v124_v48 = vadd.f32 1e-05, %v122_v47  ;;  %v1646_v47 = vld [vmem:[%s2257_s3 + $0x2dc] ss:$28 sps:$4 sm:$0xff]  }
  0xfd   :  { %1726 = vrsqrt.f32 %v124_v48  ;;  %v1644_v48 = vld [vmem:[%s2257_s3 + $0x2d8] ss:$28 sps:$4 sm:$0xff]  }
 0x107   :  { %v1727_v50 = vpop.eup %1726 }
 0x108   :  { %v126_v51 = vmul.f32 %v1727_v50, %v123_v49  ;;  %v1647_v49 = vld [vmem:[%s2257_s3 + $0x2e0] ss:$28 sps:$4 sm:$0xff]  }
 0x109   :  { %v1649_v50 = vld [vmem:[%s2257_s3 + $0x2e4] ss:$28 sps:$4 sm:$0xff]  }
 0x10a   :  { %v128_v53 = vmul.f32 %v126_v51, %v111_v43  ;;  %v130_v55 = vmul.f32 %v126_v51, %v100_v26  ;;  %v1611_v26 = vld [vmem:[%s2257_s3 + $0x190] ss:$28 sps:$4 sm:$0xff]   ;;  %v1640_v43 = vld [vmem:[%s2257_s3 + $0x2a4] ss:$28 sps:$4 sm:$0xff]  }
 0x10b   :  { %1187 = vmatprep.subr.bf16.mxu0 %v1640_v43  ;;  %v1652_v51 = vld [vmem:[%s2257_s3 + $0x314] ss:$28 sps:$4 sm:$0xff]  }
 0x10c   :  { %v129_v54 = vsub.f32 %v127_v52, %v128_v53  ;;  %1188 = vmatpush1.bf16.msra.mxu0 %v1638_v45  ;;  %v1655_v52 = vld [vmem:[%s2257_s3 + $0x31c] ss:$28 sps:$4 sm:$0xff]   ;;  %v1650_v53 = vld [vmem:[%s2257_s3 + $0x310] ss:$28 sps:$4 sm:$0xff]  }
 0x10d   :  { %1189 = vmatprep.subr.bf16.mxu0 %v1646_v47 }
 0x10e   :  { %v131_v56 = vadd.f32 %v130_v55, %v129_v54  ;;  %v1653_v54 = vld [vmem:[%s2257_s3 + $0x318] ss:$28 sps:$4 sm:$0xff]   ;;  %v1658_v55 = vld [vmem:[%s2257_s3 + $0x34c] ss:$28 sps:$4 sm:$0xff]  }
 0x110   :  { %v132_v57 = vmax.f32 %v131_v56, 0.0  ;;  %1190 = vmatpush1.bf16.msra.mxu0 %v1644_v48  ;;  %v1661_v56 = vld [vmem:[%s2257_s3 + $0x354] ss:$28 sps:$4 sm:$0xff]   ;;  %v1759_v48 = vmov 1966171168  }
 0x111   :  { %1191 = vmatprep.subr.bf16.mxu0 %v1652_v51 }
 0x112   :  { %v133_v58 = vpack.c.bf16 %v132_v57, %v132_v57  ;;  %v1656_v57 = vld [vmem:[%s2257_s3 + $0x348] ss:$28 sps:$4 sm:$0xff]  }
 0x114   :  { %276 = vmatmul.mubr.bf16.vlgmr.msra.gmra.mrb[0].mxu1 %v133_v58  ;;  %1192 = vmatpush1.bf16.msra.mxu0 %v1650_v53  ;;  %v1659_v58 = vld [vmem:[%s2257_s3 + $0x350] ss:$28 sps:$4 sm:$0xff]  }
 0x115   :  { %1205 = vmatpush1.bf16.msra.mxu1 %v1569_v62  ;;  %1193 = vmatprep.subr.bf16.mxu0 %v1658_v55  ;;  %v2061_v62 = vshrl.u32 %v153_v61, 7 }
 0x116   :  { %1206 = vmatprep.subr.bf16.mxu1 %v1577_v0  ;;  %v1355_v0 = vld [vmem:[%s2258_s4 + $0x3] ss:$8 sm:$0x3] }
 0x117   :  { %v2064_v63 = vsub.s32 0, %v2061_v62  ;;  %v2070_v1 = vsub.s32 1, %v2061_v62 }
 0x118   :  { %1194 = vmatpush1.bf16.msra.mxu0 %v1656_v57 }
 0x119   :  { %1207 = vmatpush1.bf16.msra.mxu1 %v1575_v2  ;;  %1245 = vmatprep.subr.bf16.mxu0 %v1664_v59  ;;  %v156_v2 = vrot.slane %v1355_v0, %v2064_v63  ;;  %v160_v3 = vrot.slane %v1355_v0, %v2070_v1 }
 0x11a   :  { %1208 = vmatprep.subr.bf16.mxu1 %v1583_v4 }
 0x11d   :  { %1209 = vmatpush1.bf16.msra.mxu1 %v1581_v6 }
 0x11e   :  { %1210 = vmatprep.subr.bf16.mxu1 %v1589_v8 }
 0x121   :  { %1211 = vmatpush1.bf16.msra.mxu1 %v1587_v10 }
 0x122   :  { %1212 = vmatprep.subr.bf16.mxu1 %v1595_v12 }
 0x125   :  { %1213 = vmatpush1.bf16.msra.mxu1 %v1593_v14 }
 0x126   :  { %1214 = vmatprep.subr.bf16.mxu1 %v1601_v16 }
 0x129   :  { %1215 = vmatpush1.bf16.msra.mxu1 %v1599_v18 }
 0x12a   :  { %1216 = vmatprep.subr.bf16.mxu1 %v1607_v20 }
 0x12d   :  { %1217 = vmatpush1.bf16.msra.mxu1 %v1605_v22 }
 0x12e   :  { %1218 = vmatprep.subr.bf16.mxu1 %v1613_v24 }
 0x131   :  { %1219 = vmatpush1.bf16.msra.mxu1 %v1611_v26 }
 0x132   :  { %1220 = vmatprep.subr.bf16.mxu1 %v1619_v28 }
 0x135   :  { %1221 = vmatpush1.bf16.msra.mxu1 %v1617_v30 }
 0x136   :  { %1222 = vmatprep.subr.bf16.mxu1 %v1625_v32 }
 0x139   :  { %1223 = vmatpush1.bf16.msra.mxu1 %v1623_v34 }
 0x13a   :  { %1224 = vmatprep.subr.bf16.mxu1 %v1631_v36 }
 0x13d   :  { %1225 = vmatpush1.bf16.msra.mxu1 %v1629_v38 }
 0x13e   :  { %1226 = vmatprep.subr.bf16.mxu1 %v1637_v40 }
 0x141   :  { %1227 = vmatpush1.bf16.msra.mxu1 %v1635_v42 }
 0x142   :  { %1228 = vmatprep.subr.bf16.mxu1 %v1643_v44 }
 0x145   :  { %1229 = vmatpush1.bf16.msra.mxu1 %v1641_v46 }
 0x146   :  { %1230 = vmatprep.subr.bf16.mxu1 %v1649_v50 }
 0x149   :  { %1231 = vmatpush1.bf16.msra.mxu1 %v1647_v49  ;;  %v330_v49 = vunpack.c.l.s4 %v1759_v48  ;;  %v1702_v48 = vld [vmem:[%s2257_s3 + $0x1d0] ss:$28 sps:$4 sm:$0xff]  }
 0x14a   :  { %1232 = vmatprep.subr.bf16.mxu1 %v1655_v52 }
 0x14b   :  { %v331_v50 = vunpack.c.0.s8 %v330_v49  ;;  %v1707_v49 = vld [vmem:[%s2257_s3 + $0x20c] ss:$28 sps:$4 sm:$0xff]  }
 0x14d   :  { %1233 = vmatpush1.bf16.msra.mxu1 %v1653_v54  ;;  %v334_v52 = vsub.s32 %v331_v50, %v2061_v62  ;;  %v1705_v50 = vld [vmem:[%s2257_s3 + $0x208] ss:$28 sps:$4 sm:$0xff]  }
 0x14e   :  { %1234 = vmatprep.subr.bf16.mxu1 %v1661_v56  ;;  %v1372_v56 = vld [vmem:[%s2258_s4 + $0x4] ss:$8 sm:$0x3] }
 0x151   :  { %1235 = vmatpush1.bf16.msra.mxu1 %v1659_v58 }
 0x152   :  { %1499 = vmatprep.subr.bf16.mxu1 %v1665_v60 }
 0x1e7   :  { %v277_v4 = vpop.f32.mrb[0].mxu1 }
 0x1e8   :  { %v278_v5 = vadd.f32 %v277_v4, %v156_v2  ;;  %v279_v6 = vpop.f32.mrb[1].mxu1 }
 0x1e9   :  { %v280_v7 = vadd.f32 %v279_v6, %v160_v3  ;;  %v281_v8 = vpop.f32.mrb[2].mxu1 }
 0x1ea   :  { %v284_v9 = vrot.slane %v278_v5, 4  ;;  %v298_v10 = vmul.f32 %v278_v5, %v278_v5  ;;  %v282_v11 = vpop.f32.mrb[3].mxu1  ;;  %v1373_v8 = vld [vmem:[%s2258_s4 + $0x5] ss:$8 sm:$0x3] }
 0x1eb   :  { %v290_v12 = vrot.slane %v280_v7, 4  ;;  %v299_v13 = vmul.f32 %v280_v7, %v280_v7 }
 0x1ec   :  { %v285_v14 = vadd.f32 %v284_v9, %v278_v5  ;;  %v300_v15 = vrot.slane %v298_v10, 4 }
 0x1ed   :  { %v291_v16 = vadd.f32 %v290_v12, %v280_v7  ;;  %v306_v17 = vrot.slane %v299_v13, 4 }
 0x1ee   :  { %v286_v18 = vrot.slane %v285_v14, 2  ;;  %v301_v19 = vadd.f32 %v300_v15, %v298_v10 }
 0x1ef   :  { %v292_v20 = vrot.slane %v291_v16, 2  ;;  %v307_v21 = vadd.f32 %v306_v17, %v299_v13 }
 0x1f0   :  { %v287_v22 = vadd.f32 %v286_v18, %v285_v14  ;;  %v302_v23 = vrot.slane %v301_v19, 2  ;;  %v1666_v18 = vld [vmem:[%s2257_s3 + $0x18] ss:$28 sps:$4 sm:$0xff]  }
 0x1f1   :  { %v293_v24 = vadd.f32 %v292_v20, %v291_v16  ;;  %v308_v25 = vrot.slane %v307_v21, 2  ;;  %v1670_v20 = vld [vmem:[%s2257_s3 + $0x210] ss:$28 sps:$4 sm:$0xff]  }
 0x1f2   :  { %v288_v26 = vrot.slane %v287_v22, 1  ;;  %v303_v27 = vadd.f32 %v302_v23, %v301_v19  ;;  %v1669_v19 = vld [vmem:[%s2257_s3 + $0x4c] ss:$28 sps:$4 sm:$0xff]   ;;  %v1674_v23 = vld [vmem:[%s2257_s3 + $0x84] ss:$28 sps:$4 sm:$0xff]  }
 0x1f3   :  { %v294_v28 = vrot.slane %v293_v24, 1  ;;  %v309_v29 = vadd.f32 %v308_v25, %v307_v21  ;;  %v1667_v21 = vld [vmem:[%s2257_s3 + $0x48] ss:$28 sps:$4 sm:$0xff]   ;;  %v1672_v25 = vld [vmem:[%s2257_s3 + $0x80] ss:$28 sps:$4 sm:$0xff]  }
 0x1f4   :  { %v289_v30 = vadd.f32 %v288_v26, %v287_v22  ;;  %v304_v31 = vrot.slane %v303_v27, 1  ;;  %v1671_v22 = vld [vmem:[%s2257_s3 + $0x50] ss:$28 sps:$4 sm:$0xff]   ;;  %v1676_v26 = vld [vmem:[%s2257_s3 + $0x88] ss:$28 sps:$4 sm:$0xff]  }
 0x1f5   :  { %v295_v32 = vadd.f32 %v294_v28, %v293_v24  ;;  %v310_v33 = vrot.slane %v309_v29, 1  ;;  %v1675_v24 = vld [vmem:[%s2257_s3 + $0x248] ss:$28 sps:$4 sm:$0xff]   ;;  %v1680_v28 = vld [vmem:[%s2257_s3 + $0x280] ss:$28 sps:$4 sm:$0xff]  }
 0x1f6   :  { %v296_v34 = vmul.f32 0.125, %v289_v30  ;;  %v305_v35 = vadd.f32 %v304_v31, %v303_v27  ;;  %v1679_v27 = vld [vmem:[%s2257_s3 + $0xbc] ss:$28 sps:$4 sm:$0xff]   ;;  %v1684_v31 = vld [vmem:[%s2257_s3 + $0xf4] ss:$28 sps:$4 sm:$0xff]  }
 0x1f7   :  { %v297_v36 = vmul.f32 0.125, %v295_v32  ;;  %v311_v37 = vadd.f32 %v310_v33, %v309_v29  ;;  %v1677_v29 = vld [vmem:[%s2257_s3 + $0xb8] ss:$28 sps:$4 sm:$0xff]   ;;  %v1681_v30 = vld [vmem:[%s2257_s3 + $0xc0] ss:$28 sps:$4 sm:$0xff]  }
 0x1f8   :  { %v312_v38 = vmul.f32 0.125, %v305_v35  ;;  %v314_v39 = vmul.f32 %v296_v34, %v296_v34  ;;  %v1685_v32 = vld [vmem:[%s2257_s3 + $0x2b8] ss:$28 sps:$4 sm:$0xff]   ;;  %v1682_v33 = vld [vmem:[%s2257_s3 + $0xf0] ss:$28 sps:$4 sm:$0xff]  }
 0x1f9   :  { %v313_v40 = vmul.f32 0.125, %v311_v37  ;;  %v315_v41 = vmul.f32 %v297_v36, %v297_v36  ;;  %v1689_v35 = vld [vmem:[%s2257_s3 + $0x12c] ss:$28 sps:$4 sm:$0xff]  }
 0x1fa   :  { %v316_v42 = vsub.f32 %v312_v38, %v314_v39  ;;  %v1687_v37 = vld [vmem:[%s2257_s3 + $0x128] ss:$28 sps:$4 sm:$0xff]   ;;  %v1691_v38 = vld [vmem:[%s2257_s3 + $0x130] ss:$28 sps:$4 sm:$0xff]  }
 0x1fb   :  { %v317_v43 = vsub.f32 %v313_v40, %v315_v41  ;;  %v1694_v39 = vld [vmem:[%s2257_s3 + $0x164] ss:$28 sps:$4 sm:$0xff]  }
 0x1fc   :  { %v318_v44 = vmax.f32 %v316_v42, 0.0  ;;  %v1695_v40 = vld [vmem:[%s2257_s3 + $0x328] ss:$28 sps:$4 sm:$0xff]   ;;  %v1692_v41 = vld [vmem:[%s2257_s3 + $0x160] ss:$28 sps:$4 sm:$0xff]  }
 0x1fd   :  { %v319_v45 = vmax.f32 %v317_v43, 0.0  ;;  %v1696_v42 = vld [vmem:[%s2257_s3 + $0x168] ss:$28 sps:$4 sm:$0xff]   ;;  %v1699_v43 = vld [vmem:[%s2257_s3 + $0x19c] ss:$28 sps:$4 sm:$0xff]  }
 0x1fe   :  { %v322_v46 = vadd.f32 1e-05, %v318_v44  ;;  %v1700_v44 = vld [vmem:[%s2257_s3 + $0x360] ss:$28 sps:$4 sm:$0xff]  }
 0x1ff   :  { %v323_v47 = vadd.f32 1e-05, %v319_v45  ;;  %v1697_v45 = vld [vmem:[%s2257_s3 + $0x198] ss:$28 sps:$4 sm:$0xff]  }
 0x200   :  { %1728 = vrsqrt.f32 %v322_v46  ;;  %v1701_v46 = vld [vmem:[%s2257_s3 + $0x1a0] ss:$28 sps:$4 sm:$0xff]  }
 0x201   :  { %1730 = vrsqrt.f32 %v323_v47  ;;  %v1704_v47 = vld [vmem:[%s2257_s3 + $0x1d4] ss:$28 sps:$4 sm:$0xff]  }
 0x20a   :  { %v1729_v51 = vpop.eup %1728 }
 0x20b   :  { %v1731_v53 = vpop.eup %1730 }
 0x20c   :  { %v328_v54 = vcombine.low %v1729_v51, %v1731_v53  ;;  %v1710_v51 = vld [vmem:[%s2257_s3 + $0x244] ss:$28 sps:$4 sm:$0xff]   ;;  %v1713_v53 = vld [vmem:[%s2257_s3 + $0x27c] ss:$28 sps:$4 sm:$0xff]  }
 0x20e   :  { %v335_v55 = vrot.slane %v328_v54, %v334_v52  ;;  %v1711_v54 = vld [vmem:[%s2257_s3 + $0x278] ss:$28 sps:$4 sm:$0xff]  }
 0x210   :  { %v342_v57 = vrot.slane %v335_v55, %v334_v52  ;;  %v1716_v55 = vld [vmem:[%s2257_s3 + $0x2b4] ss:$28 sps:$4 sm:$0xff]  }
 0x212   :  { %v344_v58 = vmul.f32 %v1372_v56, %v342_v57  ;;  %v1714_v56 = vld [vmem:[%s2257_s3 + $0x2b0] ss:$28 sps:$4 sm:$0xff]  }
 0x213   :  { %v1719_v57 = vld [vmem:[%s2257_s3 + $0x2ec] ss:$28 sps:$4 sm:$0xff]  }
 0x214   :  { %v351_v59 = vrot.slane %v344_v58, %v2064_v63  ;;  %v355_v60 = vrot.slane %v344_v58, %v2070_v1  ;;  %v1717_v58 = vld [vmem:[%s2257_s3 + $0x2e8] ss:$28 sps:$4 sm:$0xff]  }
 0x216   :  { %v358_v61 = vmul.f32 %v351_v59, %v296_v34  ;;  %v359_v0 = vmul.f32 %v355_v60, %v297_v36  ;;  %v380_v2 = vmul.f32 %v355_v60, %v280_v7  ;;  %v379_v3 = vmul.f32 %v351_v59, %v278_v5  ;;  %v1662_v5 = vld [vmem:[%s2257_s3 + $0x10] ss:$28 sps:$4 sm:$0xff]   ;;  %v1686_v34 = vld [vmem:[%s2257_s3 + $0xf8] ss:$28 sps:$4 sm:$0xff]   ;;  %v1722_v59 = vld [vmem:[%s2257_s3 + $0x324] ss:$28 sps:$4 sm:$0xff]  }
 0x217   :  { %v1690_v36 = vld [vmem:[%s2257_s3 + $0x2f0] ss:$28 sps:$4 sm:$0xff]   ;;  %v1720_v60 = vld [vmem:[%s2257_s3 + $0x320] ss:$28 sps:$4 sm:$0xff]  }
 0x218   :  { %v362_v4 = vcombine.low %v358_v61, %v359_v0  ;;  %v1725_v61 = vld [vmem:[%s2257_s3 + $0x35c] ss:$28 sps:$4 sm:$0xff]  }
 0x219   :  { %v1723_v0 = vld [vmem:[%s2257_s3 + $0x358] ss:$28 sps:$4 sm:$0xff]  }
 0x21a   :  { %v369_v6 = vrot.slane %v362_v4, %v334_v52 }
 0x21c   :  { %v376_v9 = vrot.slane %v369_v6, %v334_v52  ;;  %v1708_v52 = vld [vmem:[%s2257_s3 + $0x240] ss:$28 sps:$4 sm:$0xff]   ;;  %v555_v6 = vsub.s32 2, %v2061_v62  ;;  %s1760_s3 = smov [#allocation3]  }
 0x21e   :  { %v378_v10 = vsub.f32 %v1373_v8, %v376_v9  ;;  %v559_v8 = vsub.s32 3, %v2061_v62 }
 0x220   :  { %v389_v11 = vrot.slane %v378_v10, %v2070_v1  ;;  %v385_v12 = vrot.slane %v378_v10, %v2064_v63 }
 0x222   :  { %v393_v13 = vadd.f32 %v389_v11, %v380_v2  ;;  %v392_v14 = vadd.f32 %v385_v12, %v379_v3  ;;  %v1375_v2 = vld [vmem:[%s2258_s4 + $0x6] ss:$8 sm:$0xf] }
 0x223   :  { %v1376_v3 = vld [vmem:[%s2258_s4 + $0x6] ss:$8 sm:$0x70]  ;;  %s1340_s4 = sshll.u32 %s1760_s3, 4  ;;  %s1341_s4 = int_to_ptr.vmem [resolvable:$true] %s1340_s4 }
 0x224   :  { %v395_v15 = vmax.f32 %v393_v13, 0.0  ;;  %v394_v16 = vmax.f32 %v392_v14, 0.0  ;;  %v543_v4 = vor.u32 %v1376_v3, %v1375_v2  ;;  %s1732_s21 = scalar_lea.vmem %s1341_s4, 896  ;;  %p1737_p1 = scmp.lt.s32.totalorder %s1341_s4, %s1341_s4 }
 0x225   :  { %p1733_p0 = scmp.ne.s32.totalorder %s1341_s4, %s1732_s21  ;;  %p1738_p2 = scmp.lt.s32.totalorder %s1732_s21, %s1732_s21 }
 0x226   :  { %v1493_v17 = vpack.c.bf16 %v395_v15, %v395_v15  ;;  %v2088_v7 = vpack.c.bf16 %v394_v16, %v394_v16  ;;  %v548_v9 = vrot.slane %v543_v4, %v2064_v63  ;;  %v556_v10 = vrot.slane %v543_v4, %v555_v6 }
 0x227   :  { %v552_v11 = vrot.slane %v543_v4, %v2070_v1  ;;  %v560_v12 = vrot.slane %v543_v4, %v559_v8  ;;  %v571_v63 = vsub.s32 6, %v2061_v62  ;;  %p1739_p3 = por %p1738_p2, %p1737_p1 }
 0x228   :  { %1195 = vmatprep.mubr.bf16.mxu0 %v1493_v17  ;;  %1236 = vmatprep.mubr.bf16.mxu1 %v1493_v17 }
 0x229   :  { %1196 = vmatmul.mubr.bf16.vlgmr.msra.gmra.mrb[4].mxu0 %v2088_v7  ;;  %1237 = vmatmul.mubr.bf16.vlgmr.msra.gmra.mrb[4].mxu1 %v2088_v7  ;;  %p1740_p4 = pnand %p1739_p3, %p1733_p0 }
 0x22a   :  { %1246 = vmatpush1.bf16.msra.mxu0 %v1662_v5  ;;  %1500 = vmatpush3.bf16.msra.mxu1 %v1666_v18 }
 0x22b   :  { %1277 = vmatprep.mubr.bf16.mxu0 %v1493_v17  ;;  %1318 = vmatprep.mubr.bf16.mxu1 %v1493_v17 }
 0x22c   :  { %1247 = vmatprep.subr.bf16.mxu0 %v1669_v19  ;;  %1501 = vmatprep.subr.bf16.mxu1 %v1670_v20 }
 0x22e   :  { %1248 = vmatpush1.bf16.msra.mxu0 %v1667_v21  ;;  %1502 = vmatpush3.bf16.msra.mxu1 %v1671_v22 }
 0x22f   :  { %1249 = vmatprep.subr.bf16.mxu0 %v1674_v23  ;;  %1503 = vmatprep.subr.bf16.mxu1 %v1675_v24  ;;  %v572_v23 = vrot.slane %v543_v4, %v571_v63 }
 0x232   :  { %1250 = vmatpush1.bf16.msra.mxu0 %v1672_v25  ;;  %1504 = vmatpush3.bf16.msra.mxu1 %v1676_v26 }
 0x233   :  { %1251 = vmatprep.subr.bf16.mxu0 %v1679_v27  ;;  %1505 = vmatprep.subr.bf16.mxu1 %v1680_v28 }
 0x236   :  { %1252 = vmatpush1.bf16.msra.mxu0 %v1677_v29  ;;  %1506 = vmatpush3.bf16.msra.mxu1 %v1681_v30  ;;  %v563_v29 = vsub.s32 4, %v2061_v62  ;;  %v567_v30 = vsub.s32 5, %v2061_v62 }
 0x237   :  { %1253 = vmatprep.subr.bf16.mxu0 %v1684_v31  ;;  %1507 = vmatprep.subr.bf16.mxu1 %v1685_v32 }
 0x238   :  { %v564_v31 = vrot.slane %v543_v4, %v563_v29  ;;  %v568_v32 = vrot.slane %v543_v4, %v567_v30 }
 0x23a   :  { %1254 = vmatpush1.bf16.msra.mxu0 %v1682_v33  ;;  %1508 = vmatpush3.bf16.msra.mxu1 %v1686_v34 }
 0x23b   :  { %1255 = vmatprep.subr.bf16.mxu0 %v1689_v35  ;;  %1509 = vmatprep.subr.bf16.mxu1 %v1690_v36 }
 0x23e   :  { %1256 = vmatpush1.bf16.msra.mxu0 %v1687_v37  ;;  %1510 = vmatpush3.bf16.msra.mxu1 %v1691_v38 }
 0x23f   :  { %1257 = vmatprep.subr.bf16.mxu0 %v1694_v39  ;;  %1511 = vmatprep.subr.bf16.mxu1 %v1695_v40 }
 0x242   :  { %1258 = vmatpush1.bf16.msra.mxu0 %v1692_v41  ;;  %1512 = vmatpush3.bf16.msra.mxu1 %v1696_v42 }
 0x243   :  { %1259 = vmatprep.subr.bf16.mxu0 %v1699_v43  ;;  %1513 = vmatprep.subr.bf16.mxu1 %v1700_v44 }
 0x246   :  { %1260 = vmatpush1.bf16.msra.mxu0 %v1697_v45  ;;  %1514 = vmatpush3.bf16.msra.mxu1 %v1701_v46 }
 0x247   :  { %1261 = vmatprep.subr.bf16.mxu0 %v1704_v47 }
 0x249   :  { %1319 = vmatmul.mubr.bf16.vlgmr.msra.gmra.mrb[8].mxu1 %v2088_v7 }
 0x24a   :  { %1262 = vmatpush1.bf16.msra.mxu0 %v1702_v48 }
 0x24b   :  { %1263 = vmatprep.subr.bf16.mxu0 %v1707_v49 }
 0x24e   :  { %1264 = vmatpush1.bf16.msra.mxu0 %v1705_v50 }
 0x24f   :  { %1265 = vmatprep.subr.bf16.mxu0 %v1710_v51 }
 0x252   :  { %1266 = vmatpush1.bf16.msra.mxu0 %v1708_v52 }
 0x253   :  { %1267 = vmatprep.subr.bf16.mxu0 %v1713_v53 }
 0x256   :  { %1268 = vmatpush1.bf16.msra.mxu0 %v1711_v54 }
 0x257   :  { %1269 = vmatprep.subr.bf16.mxu0 %v1716_v55 }
 0x25a   :  { %1270 = vmatpush1.bf16.msra.mxu0 %v1714_v56 }
 0x25b   :  { %1271 = vmatprep.subr.bf16.mxu0 %v1719_v57 }
 0x25e   :  { %1272 = vmatpush1.bf16.msra.mxu0 %v1717_v58 }
 0x25f   :  { %1273 = vmatprep.subr.bf16.mxu0 %v1722_v59 }
 0x262   :  { %1274 = vmatpush1.bf16.msra.mxu0 %v1720_v60 }
 0x263   :  { %1275 = vmatprep.subr.bf16.mxu0 %v1725_v61 }
 0x266   :  { %1276 = vmatpush1.bf16.msra.mxu0 %v1723_v0 }
 0x269   :  { %1278 = vmatmul.mubr.bf16.vlgmr.msra.gmra.mrb[8].mxu0 %v2088_v7 }
 0x2fc   :  { %v1197_v13 = vpop.f32.mrb[4].mxu0  ;;  %v1238_v14 = vpop.f32.mrb[4].mxu1 }
 0x2fd   :  { %v1198_v15 = vadd.f32 %v1197_v13, %v548_v9  ;;  %v1239_v16 = vadd.f32 %v1238_v14, %v556_v10  ;;  %v1199_v17 = vpop.f32.mrb[5].mxu0  ;;  %v1240_v5 = vpop.f32.mrb[5].mxu1 }
 0x2fe   :  { %v1200_v7 = vadd.f32 %v1199_v17, %v552_v11  ;;  %v1241_v18 = vadd.f32 %v1240_v5, %v560_v12  ;;  %v1201_v19 = vpop.f32.mrb[6].mxu0  ;;  %v1242_v20 = vpop.f32.mrb[6].mxu1 }
 0x2ff   :  { %1326 = vst [vmem:[#allocation3] sm:$0xff] %v1198_v15  ;;  %1328 = vst [vmem:[#allocation3 + $0x10] sm:$0xff] %v1239_v16  ;;  %v1202_v21 = vpop.f32.mrb[7].mxu0  ;;  %v1243_v22 = vpop.f32.mrb[7].mxu1 }
 0x300   :  { %1327 = vst [vmem:[#allocation3 + $0x8] sm:$0xff] %v1200_v7  ;;  %1329 = vst [vmem:[#allocation3 + $0x18] sm:$0xff] %v1241_v18 }
 0x31c   :  { %v1515_v1 = vpop.f32.mrb[8].mxu1 }
 0x31d   :  { %v1516_v24 = vpop.f32.mrb[9].mxu1 }
 0x31e   :  { %v1517_v25 = vadd.f32 %v1516_v24, %v1515_v1  ;;  %v1518_v26 = vpop.f32.mrb[10].mxu1 }
 0x31f   :  { %v1519_v27 = vpop.f32.mrb[11].mxu1 }
 0x320   :  { %v1321_v28 = vadd.f32 %v1517_v25, %v572_v23 }
 0x322   :  { %1333 = vst.msk [vmem:[#allocation3 + $0x30] sm:$0xff] %vm1332_vm2, %v1321_v28 }
 0x33c   :  { %v1279_v33 = vpop.f32.mrb[8].mxu0 }
 0x33d   :  { %v1280_v34 = vadd.f32 %v1279_v33, %v564_v31  ;;  %v1281_v35 = vpop.f32.mrb[9].mxu0 }
 0x33e   :  { %v1282_v36 = vadd.f32 %v1281_v35, %v568_v32  ;;  %v1283_v37 = vpop.f32.mrb[10].mxu0 }
 0x33f   :  { %1330 = vst [vmem:[#allocation3 + $0x20] sm:$0xff] %v1280_v34  ;;  %v1284_v38 = vpop.f32.mrb[11].mxu0 }
 0x340   :  { %1331 = vst [vmem:[#allocation3 + $0x28] sm:$0xff] %v1282_v36 }
 0x341   :  { %1743 = shalt.err (!%p1740_p4)
}
 0x342   :  { %s1744_s24 = scalar_lea.hbm %s2259_s5, 896 }
 0x343   :  { %p1745_p5 = scmp.ne.s32.totalorder %s2259_s5, %s1744_s24  ;;  %p1748_p6 = scmp.lt.u32.totalorder %s1744_s24, %s2259_s5 }
 0x345   :  { %p1750_p7 = pnand %p1748_p6, %p1745_p5 }
 0x347   :  { %1753 = shalt.err (!%p1750_p7)
}
 0x348   :  { %1343 = dma.vmem_to_hbm [thread:$0]  %s1341_s4, 896, %s2259_s5, [#allocation4]  }
 0x349   :  { %1754 = dma.done.wait [#allocation4], 896  }
 0x34a   :  { %1755 = vsyncadd [#allocation4], 4294966400 }
 0x34b   :  { %1347 = vsyncpa [#allocation4], 1 }

// kernel: tpu_custom_call.1
= control target key start
LH: loop header
LB: loop body
LE: loop exit
PB: predicated region body
PF: predicated region fallthrough
CT: control target
= control target key end

     0   :  { %v1756_v1 = vmov 0.0   ;;  %vm1757_vm0 = vmmov 0   ;;  %vm61_vm1 = vcmask 523264   ;;  %s2254_s0 = inlined_call_operand.vmem [shape: f32[8,64], index: 0, kind: input, shape index: {}]   ;;  %s2255_s1 = inlined_call_operand.vmem [shape: bf16[64,128], index: 1, kind: input, shape index: {}]   ;;  %s2256_s2 = inlined_call_operand.vmem [shape: bf16[128,256], index: 2, kind: input, shape index: {}]   ;;  %s2257_s3 = inlined_call_operand.vmem [shape: bf16[256,784], index: 3, kind: input, shape index: {}]   ;;  %s2258_s4 = inlined_call_operand.vmem [shape: f32[8,784], index: 4, kind: input, shape index: {}]   ;;  %s2259_s5 = inlined_call_operand.hbm [shape: f32[8,784], index: 5, kind: output, shape index: {}]  }
   0x1   :  { %v1538_v0 = vld [vmem:[%s2255_s1] sm:$0xff]   ;;  %1521 = vmatprep.subr.bf16.mxu0 %v1756_v1  ;;  %v1539_v2 = vld [vmem:[%s2255_s1 + $0x8] sm:$0xff]   ;;  %1529 = vmatprep.mubr.msk.bf16.mxu0 %vm1757_vm0, %v1756_v1  ;;  %v1540_v3 = vld [vmem:[%s2255_s1 + $0x10] sm:$0xff]  }
   0x2   :  { %1522 = vmatpush3.bf16.msra.mxu0 %v1538_v0  ;;  %v1541_v4 = vld [vmem:[%s2255_s1 + $0x18] sm:$0xff]   ;;  %v26_v5 = vld [vmem:[%s2254_s0] sm:$0xff] }
   0x3   :  { %1523 = vmatprep.subr.bf16.mxu0 %v1756_v1  ;;  %v27_v6 = vpack.c.bf16 %v26_v5, %v26_v5 }
   0x6   :  { %1524 = vmatpush3.bf16.msra.mxu0 %v1539_v2 }
   0x7   :  { %1525 = vmatprep.subr.bf16.mxu0 %v1756_v1 }
   0xa   :  { %1526 = vmatpush3.bf16.msra.mxu0 %v1540_v3 }
   0xb   :  { %1527 = vmatprep.subr.bf16.mxu0 %v1756_v1 }
   0xe   :  { %1528 = vmatpush3.bf16.msra.mxu0 %v1541_v4 }
  0x11   :  { %1530 = vmatmul.mubr.msk.bf16.vlgmr.msra.gmra.mrb[0].mxu0 %vm61_vm1, %v27_v6 }
  0x12   :  { %10 = vsyncpa [#allocation4], 0  ;;  %v1542_v7 = vld [vmem:[%s2256_s2 + $0x4] ss:$8 sps:$4 sm:$0xff]   ;;  %v1544_v8 = vld [vmem:[%s2256_s2] ss:$8 sps:$4 sm:$0xff]  }
  0x13   :  { %243 = vmatprep.subr.bf16.mxu1 %v1542_v7  ;;  %v1545_v9 = vld [vmem:[%s2256_s2 + $0x14] ss:$8 sps:$4 sm:$0xff]   ;;  %v1547_v10 = vld [vmem:[%s2256_s2 + $0x10] ss:$8 sps:$4 sm:$0xff]   ;;  %v1548_v11 = vld [vmem:[%s2256_s2 + $0x24] ss:$8 sps:$4 sm:$0xff]  }
  0x14   :  { %244 = vmatpush1.bf16.msra.mxu1 %v1544_v8  ;;  %v1550_v12 = vld [vmem:[%s2256_s2 + $0x20] ss:$8 sps:$4 sm:$0xff]   ;;  %v1551_v13 = vld [vmem:[%s2256_s2 + $0x34] ss:$8 sps:$4 sm:$0xff]   ;;  %v1758_v14 = vmov 0   ;;  %vm1332_vm2 = vcmask 130048  }
  0x15   :  { %245 = vmatprep.subr.bf16.mxu1 %v1545_v9  ;;  %275 = vmatprep.mubr.bf16.mxu1 %v1758_v14  ;;  %v1553_v15 = vld [vmem:[%s2256_s2 + $0x30] ss:$8 sps:$4 sm:$0xff]   ;;  %v1554_v16 = vld [vmem:[%s2256_s2 + $0x44] ss:$8 sps:$4 sm:$0xff]   ;;  %v1556_v17 = vld [vmem:[%s2256_s2 + $0x40] ss:$8 sps:$4 sm:$0xff]  }
  0x16   :  { %v1557_v18 = vld [vmem:[%s2256_s2 + $0x54] ss:$8 sps:$4 sm:$0xff]   ;;  %v1559_v19 = vld [vmem:[%s2256_s2 + $0x50] ss:$8 sps:$4 sm:$0xff]   ;;  %v1560_v20 = vld [vmem:[%s2256_s2 + $0x64] ss:$8 sps:$4 sm:$0xff]  }
  0x17   :  { %v1562_v21 = vld [vmem:[%s2256_s2 + $0x60] ss:$8 sps:$4 sm:$0xff]   ;;  %v1563_v22 = vld [vmem:[%s2256_s2 + $0x74] ss:$8 sps:$4 sm:$0xff]   ;;  %v1565_v23 = vld [vmem:[%s2256_s2 + $0x70] ss:$8 sps:$4 sm:$0xff]  }
  0x18   :  { %246 = vmatpush1.bf16.msra.mxu1 %v1547_v10  ;;  %v36_v24 = vld [vmem:[%s2258_s4] ss:$0 sm:$0xff]  ;;  %v123_v49 = vld [vmem:[%s2258_s4 + $0x1] ss:$0 sm:$0xff]  ;;  %v127_v52 = vld [vmem:[%s2258_s4 + $0x2] ss:$0 sm:$0xff] }
  0x19   :  { %247 = vmatprep.subr.bf16.mxu1 %v1548_v11  ;;  %v1568_v59 = vld [vmem:[%s2257_s3 + $0x4] ss:$28 sps:$4 sm:$0xff]   ;;  %v1571_v60 = vld [vmem:[%s2257_s3 + $0xc] ss:$28 sps:$4 sm:$0xff]   ;;  %v1574_v63 = vld [vmem:[%s2257_s3 + $0x3c] ss:$28 sps:$4 sm:$0xff]  }
  0x1a   :  { %v1566_v61 = vld [vmem:[%s2257_s3] ss:$28 sps:$4 sm:$0xff]   ;;  %v1569_v62 = vld [vmem:[%s2257_s3 + $0x8] ss:$28 sps:$4 sm:$0xff]   ;;  %1163 = vmatprep.subr.bf16.mxu0 %v1568_v59  ;;  %v1572_v1 = vld [vmem:[%s2257_s3 + $0x38] ss:$28 sps:$4 sm:$0xff]  }
  0x1b   :  { %1164 = vmatpush1.bf16.msra.mxu0 %v1566_v61  ;;  %v1577_v0 = vld [vmem:[%s2257_s3 + $0x44] ss:$28 sps:$4 sm:$0xff]   ;;  %v1580_v3 = vld [vmem:[%s2257_s3 + $0x74] ss:$28 sps:$4 sm:$0xff]   ;;  %v1583_v4 = vld [vmem:[%s2257_s3 + $0x7c] ss:$28 sps:$4 sm:$0xff]   ;;  %v153_v61 = vlaneseq }
  0x1c   :  { %248 = vmatpush1.bf16.msra.mxu1 %v1550_v12  ;;  %v1575_v2 = vld [vmem:[%s2257_s3 + $0x40] ss:$28 sps:$4 sm:$0xff]   ;;  %1165 = vmatprep.subr.bf16.mxu0 %v1574_v63  ;;  %v1578_v5 = vld [vmem:[%s2257_s3 + $0x70] ss:$28 sps:$4 sm:$0xff]   ;;  %v1581_v6 = vld [vmem:[%s2257_s3 + $0x78] ss:$28 sps:$4 sm:$0xff]  }
  0x1d   :  { %249 = vmatprep.subr.bf16.mxu1 %v1551_v13  ;;  %v1586_v7 = vld [vmem:[%s2257_s3 + $0xac] ss:$28 sps:$4 sm:$0xff]   ;;  %v1589_v8 = vld [vmem:[%s2257_s3 + $0xb4] ss:$28 sps:$4 sm:$0xff]   ;;  %v1592_v11 = vld [vmem:[%s2257_s3 + $0xe4] ss:$28 sps:$4 sm:$0xff]  }
  0x1e   :  { %v1584_v9 = vld [vmem:[%s2257_s3 + $0xa8] ss:$28 sps:$4 sm:$0xff]   ;;  %v1587_v10 = vld [vmem:[%s2257_s3 + $0xb0] ss:$28 sps:$4 sm:$0xff]   ;;  %v1590_v13 = vld [vmem:[%s2257_s3 + $0xe0] ss:$28 sps:$4 sm:$0xff]  }
  0x1f   :  { %1166 = vmatpush1.bf16.msra.mxu0 %v1572_v1  ;;  %v1595_v12 = vld [vmem:[%s2257_s3 + $0xec] ss:$28 sps:$4 sm:$0xff]   ;;  %v1664_v59 = vld [vmem:[%s2257_s3 + $0x14] ss:$28 sps:$4 sm:$0xff]  }
  0x20   :  { %250 = vmatpush1.bf16.msra.mxu1 %v1553_v15  ;;  %1167 = vmatprep.subr.bf16.mxu0 %v1580_v3  ;;  %v1593_v14 = vld [vmem:[%s2257_s3 + $0xe8] ss:$28 sps:$4 sm:$0xff]   ;;  %v1598_v15 = vld [vmem:[%s2257_s3 + $0x11c] ss:$28 sps:$4 sm:$0xff]  }
  0x21   :  { %251 = vmatprep.subr.bf16.mxu1 %v1554_v16  ;;  %v1601_v16 = vld [vmem:[%s2257_s3 + $0x124] ss:$28 sps:$4 sm:$0xff]  }
  0x23   :  { %1168 = vmatpush1.bf16.msra.mxu0 %v1578_v5 }
  0x24   :  { %252 = vmatpush1.bf16.msra.mxu1 %v1556_v17  ;;  %1169 = vmatprep.subr.bf16.mxu0 %v1586_v7  ;;  %v1596_v17 = vld [vmem:[%s2257_s3 + $0x118] ss:$28 sps:$4 sm:$0xff]  }
  0x25   :  { %253 = vmatprep.subr.bf16.mxu1 %v1557_v18  ;;  %v1599_v18 = vld [vmem:[%s2257_s3 + $0x120] ss:$28 sps:$4 sm:$0xff]  }
  0x27   :  { %1170 = vmatpush1.bf16.msra.mxu0 %v1584_v9 }
  0x28   :  { %254 = vmatpush1.bf16.msra.mxu1 %v1559_v19  ;;  %1171 = vmatprep.subr.bf16.mxu0 %v1592_v11  ;;  %v1604_v19 = vld [vmem:[%s2257_s3 + $0x154] ss:$28 sps:$4 sm:$0xff]  }
  0x29   :  { %255 = vmatprep.subr.bf16.mxu1 %v1560_v20  ;;  %v1607_v20 = vld [vmem:[%s2257_s3 + $0x15c] ss:$28 sps:$4 sm:$0xff]  }
  0x2b   :  { %1172 = vmatpush1.bf16.msra.mxu0 %v1590_v13 }
  0x2c   :  { %256 = vmatpush1.bf16.msra.mxu1 %v1562_v21  ;;  %1173 = vmatprep.subr.bf16.mxu0 %v1598_v15  ;;  %v1602_v21 = vld [vmem:[%s2257_s3 + $0x150] ss:$28 sps:$4 sm:$0xff]  }
  0x2d   :  { %257 = vmatprep.subr.bf16.mxu1 %v1563_v22  ;;  %v1605_v22 = vld [vmem:[%s2257_s3 + $0x158] ss:$28 sps:$4 sm:$0xff]  }
  0x2f   :  { %1174 = vmatpush1.bf16.msra.mxu0 %v1596_v17 }
  0x30   :  { %258 = vmatpush1.bf16.msra.mxu1 %v1565_v23  ;;  %1175 = vmatprep.subr.bf16.mxu0 %v1604_v19  ;;  %v1610_v23 = vld [vmem:[%s2257_s3 + $0x18c] ss:$28 sps:$4 sm:$0xff]  }
  0x31   :  { %1204 = vmatprep.subr.bf16.mxu1 %v1571_v60  ;;  %v1665_v60 = vld [vmem:[%s2257_s3 + $0x1d8] ss:$28 sps:$4 sm:$0xff]  }
  0x33   :  { %1176 = vmatpush1.bf16.msra.mxu0 %v1602_v21 }
  0x34   :  { %1177 = vmatprep.subr.bf16.mxu0 %v1610_v23 }
  0xe4   :  { %v99_v25 = vpop.f32.mrb[0].mxu0 }
  0xe5   :  { %v100_v26 = vadd.f32 %v99_v25, %v36_v24  ;;  %v1531_v27 = vpop.f32.mrb[1].mxu0  ;;  %v1613_v24 = vld [vmem:[%s2257_s3 + $0x194] ss:$28 sps:$4 sm:$0xff]   ;;  %v1608_v25 = vld [vmem:[%s2257_s3 + $0x188] ss:$28 sps:$4 sm:$0xff]  }
  0xe6   :  { %v102_v28 = vpop.f32.mrb[2].mxu0  ;;  %1178 = vmatpush1.bf16.msra.mxu0 %v1608_v25  ;;  %v1616_v27 = vld [vmem:[%s2257_s3 + $0x1c4] ss:$28 sps:$4 sm:$0xff]  }
  0xe7   :  { %v105_v29 = vrot.slane %v100_v26, 4  ;;  %v112_v30 = vmul.f32 %v100_v26, %v100_v26  ;;  %v1532_v31 = vpop.f32.mrb[3].mxu0  ;;  %v1619_v28 = vld [vmem:[%s2257_s3 + $0x1cc] ss:$28 sps:$4 sm:$0xff]   ;;  %1179 = vmatprep.subr.bf16.mxu0 %v1616_v27 }
  0xe8   :  { %v1622_v31 = vld [vmem:[%s2257_s3 + $0x1fc] ss:$28 sps:$4 sm:$0xff]  }
  0xe9   :  { %v106_v32 = vadd.f32 %v105_v29, %v100_v26  ;;  %v113_v33 = vrot.slane %v112_v30, 4  ;;  %v1614_v29 = vld [vmem:[%s2257_s3 + $0x1c0] ss:$28 sps:$4 sm:$0xff]  }
  0xea   :  { %1180 = vmatpush1.bf16.msra.mxu0 %v1614_v29 }
  0xeb   :  { %v107_v34 = vrot.slane %v106_v32, 2  ;;  %v114_v35 = vadd.f32 %v113_v33, %v112_v30  ;;  %v1617_v30 = vld [vmem:[%s2257_s3 + $0x1c8] ss:$28 sps:$4 sm:$0xff]   ;;  %v1620_v33 = vld [vmem:[%s2257_s3 + $0x1f8] ss:$28 sps:$4 sm:$0xff]   ;;  %1181 = vmatprep.subr.bf16.mxu0 %v1622_v31 }
  0xed   :  { %v108_v36 = vadd.f32 %v107_v34, %v106_v32  ;;  %v115_v37 = vrot.slane %v114_v35, 2  ;;  %v1625_v32 = vld [vmem:[%s2257_s3 + $0x204] ss:$28 sps:$4 sm:$0xff]  }
  0xee   :  { %v1623_v34 = vld [vmem:[%s2257_s3 + $0x200] ss:$28 sps:$4 sm:$0xff]   ;;  %1182 = vmatpush1.bf16.msra.mxu0 %v1620_v33 }
  0xef   :  { %v109_v38 = vrot.slane %v108_v36, 1  ;;  %v116_v39 = vadd.f32 %v115_v37, %v114_v35  ;;  %v1628_v35 = vld [vmem:[%s2257_s3 + $0x234] ss:$28 sps:$4 sm:$0xff]  }
  0xf0   :  { %v1626_v37 = vld [vmem:[%s2257_s3 + $0x230] ss:$28 sps:$4 sm:$0xff]   ;;  %1183 = vmatprep.subr.bf16.mxu0 %v1628_v35 }
  0xf1   :  { %v117_v40 = vrot.slane %v116_v39, 1  ;;  %v110_v41 = vadd.f32 %v109_v38, %v108_v36  ;;  %v1631_v36 = vld [vmem:[%s2257_s3 + $0x23c] ss:$28 sps:$4 sm:$0xff]  }
  0xf2   :  { %v1629_v38 = vld [vmem:[%s2257_s3 + $0x238] ss:$28 sps:$4 sm:$0xff]   ;;  %1184 = vmatpush1.bf16.msra.mxu0 %v1626_v37 }
  0xf3   :  { %v118_v42 = vadd.f32 %v117_v40, %v116_v39  ;;  %v111_v43 = vmul.f32 0.125, %v110_v41  ;;  %v1634_v39 = vld [vmem:[%s2257_s3 + $0x26c] ss:$28 sps:$4 sm:$0xff]   ;;  %v1637_v40 = vld [vmem:[%s2257_s3 + $0x274] ss:$28 sps:$4 sm:$0xff]  }
  0xf4   :  { %v1632_v41 = vld [vmem:[%s2257_s3 + $0x268] ss:$28 sps:$4 sm:$0xff]   ;;  %1185 = vmatprep.subr.bf16.mxu0 %v1634_v39 }
  0xf5   :  { %v119_v44 = vmul.f32 0.125, %v118_v42  ;;  %v120_v45 = vmul.f32 %v111_v43, %v111_v43  ;;  %v1635_v42 = vld [vmem:[%s2257_s3 + $0x270] ss:$28 sps:$4 sm:$0xff]  }
  0xf6   :  { %1186 = vmatpush1.bf16.msra.mxu0 %v1632_v41 }
  0xf7   :  { %v121_v46 = vsub.f32 %v119_v44, %v120_v45  ;;  %v1643_v44 = vld [vmem:[%s2257_s3 + $0x2ac] ss:$28 sps:$4 sm:$0xff]   ;;  %v1638_v45 = vld [vmem:[%s2257_s3 + $0x2a0] ss:$28 sps:$4 sm:$0xff]  }
  0xf9   :  { %v122_v47 = vmax.f32 %v121_v46, 0.0  ;;  %v1641_v46 = vld [vmem:[%s2257_s3 + $0x2a8] ss:$28 sps:$4 sm:$0xff]  }
  0xfb   :  { %v124_v48 = vadd.f32 1e-05, %v122_v47  ;;  %v1646_v47 = vld [vmem:[%s2257_s3 + $0x2dc] ss:$28 sps:$4 sm:$0xff]  }
  0xfd   :  { %1726 = vrsqrt.f32 %v124_v48  ;;  %v1644_v48 = vld [vmem:[%s2257_s3 + $0x2d8] ss:$28 sps:$4 sm:$0xff]  }
 0x107   :  { %v1727_v50 = vpop.eup %1726 }
 0x108   :  { %v126_v51 = vmul.f32 %v1727_v50, %v123_v49  ;;  %v1647_v49 = vld [vmem:[%s2257_s3 + $0x2e0] ss:$28 sps:$4 sm:$0xff]  }
 0x109   :  { %v1649_v50 = vld [vmem:[%s2257_s3 + $0x2e4] ss:$28 sps:$4 sm:$0xff]  }
 0x10a   :  { %v128_v53 = vmul.f32 %v126_v51, %v111_v43  ;;  %v130_v55 = vmul.f32 %v126_v51, %v100_v26  ;;  %v1611_v26 = vld [vmem:[%s2257_s3 + $0x190] ss:$28 sps:$4 sm:$0xff]   ;;  %v1640_v43 = vld [vmem:[%s2257_s3 + $0x2a4] ss:$28 sps:$4 sm:$0xff]  }
 0x10b   :  { %1187 = vmatprep.subr.bf16.mxu0 %v1640_v43  ;;  %v1652_v51 = vld [vmem:[%s2257_s3 + $0x314] ss:$28 sps:$4 sm:$0xff]  }
 0x10c   :  { %v129_v54 = vsub.f32 %v127_v52, %v128_v53  ;;  %1188 = vmatpush1.bf16.msra.mxu0 %v1638_v45  ;;  %v1655_v52 = vld [vmem:[%s2257_s3 + $0x31c] ss:$28 sps:$4 sm:$0xff]   ;;  %v1650_v53 = vld [vmem:[%s2257_s3 + $0x310] ss:$28 sps:$4 sm:$0xff]  }
 0x10d   :  { %1189 = vmatprep.subr.bf16.mxu0 %v1646_v47 }
 0x10e   :  { %v131_v56 = vadd.f32 %v130_v55, %v129_v54  ;;  %v1653_v54 = vld [vmem:[%s2257_s3 + $0x318] ss:$28 sps:$4 sm:$0xff]   ;;  %v1658_v55 = vld [vmem:[%s2257_s3 + $0x34c] ss:$28 sps:$4 sm:$0xff]  }
 0x110   :  { %v132_v57 = vmax.f32 %v131_v56, 0.0  ;;  %1190 = vmatpush1.bf16.msra.mxu0 %v1644_v48  ;;  %v1661_v56 = vld [vmem:[%s2257_s3 + $0x354] ss:$28 sps:$4 sm:$0xff]   ;;  %v1759_v48 = vmov 1966171168  }
 0x111   :  { %1191 = vmatprep.subr.bf16.mxu0 %v1652_v51 }
 0x112   :  { %v133_v58 = vpack.c.bf16 %v132_v57, %v132_v57  ;;  %v1656_v57 = vld [vmem:[%s2257_s3 + $0x348] ss:$28 sps:$4 sm:$0xff]  }
 0x114   :  { %276 = vmatmul.mubr.bf16.vlgmr.msra.gmra.mrb[0].mxu1 %v133_v58  ;;  %1192 = vmatpush1.bf16.msra.mxu0 %v1650_v53  ;;  %v1659_v58 = vld [vmem:[%s2257_s3 + $0x350] ss:$28 sps:$4 sm:$0xff]  }
 0x115   :  { %1205 = vmatpush1.bf16.msra.mxu1 %v1569_v62  ;;  %1193 = vmatprep.subr.bf16.mxu0 %v1658_v55  ;;  %v2061_v62 = vshrl.u32 %v153_v61, 7 }
 0x116   :  { %1206 = vmatprep.subr.bf16.mxu1 %v1577_v0  ;;  %v1355_v0 = vld [vmem:[%s2258_s4 + $0x3] ss:$8 sm:$0x3] }
 0x117   :  { %v2064_v63 = vsub.s32 0, %v2061_v62  ;;  %v2070_v1 = vsub.s32 1, %v2061_v62 }
 0x118   :  { %1194 = vmatpush1.bf16.msra.mxu0 %v1656_v57 }
 0x119   :  { %1207 = vmatpush1.bf16.msra.mxu1 %v1575_v2  ;;  %1245 = vmatprep.subr.bf16.mxu0 %v1664_v59  ;;  %v156_v2 = vrot.slane %v1355_v0, %v2064_v63  ;;  %v160_v3 = vrot.slane %v1355_v0, %v2070_v1 }
 0x11a   :  { %1208 = vmatprep.subr.bf16.mxu1 %v1583_v4 }
 0x11d   :  { %1209 = vmatpush1.bf16.msra.mxu1 %v1581_v6 }
 0x11e   :  { %1210 = vmatprep.subr.bf16.mxu1 %v1589_v8 }
 0x121   :  { %1211 = vmatpush1.bf16.msra.mxu1 %v1587_v10 }
 0x122   :  { %1212 = vmatprep.subr.bf16.mxu1 %v1595_v12 }
 0x125   :  { %1213 = vmatpush1.bf16.msra.mxu1 %v1593_v14 }
 0x126   :  { %1214 = vmatprep.subr.bf16.mxu1 %v1601_v16 }
 0x129   :  { %1215 = vmatpush1.bf16.msra.mxu1 %v1599_v18 }
 0x12a   :  { %1216 = vmatprep.subr.bf16.mxu1 %v1607_v20 }
 0x12d   :  { %1217 = vmatpush1.bf16.msra.mxu1 %v1605_v22 }
 0x12e   :  { %1218 = vmatprep.subr.bf16.mxu1 %v1613_v24 }
 0x131   :  { %1219 = vmatpush1.bf16.msra.mxu1 %v1611_v26 }
 0x132   :  { %1220 = vmatprep.subr.bf16.mxu1 %v1619_v28 }
 0x135   :  { %1221 = vmatpush1.bf16.msra.mxu1 %v1617_v30 }
 0x136   :  { %1222 = vmatprep.subr.bf16.mxu1 %v1625_v32 }
 0x139   :  { %1223 = vmatpush1.bf16.msra.mxu1 %v1623_v34 }
 0x13a   :  { %1224 = vmatprep.subr.bf16.mxu1 %v1631_v36 }
 0x13d   :  { %1225 = vmatpush1.bf16.msra.mxu1 %v1629_v38 }
 0x13e   :  { %1226 = vmatprep.subr.bf16.mxu1 %v1637_v40 }
 0x141   :  { %1227 = vmatpush1.bf16.msra.mxu1 %v1635_v42 }
 0x142   :  { %1228 = vmatprep.subr.bf16.mxu1 %v1643_v44 }
 0x145   :  { %1229 = vmatpush1.bf16.msra.mxu1 %v1641_v46 }
 0x146   :  { %1230 = vmatprep.subr.bf16.mxu1 %v1649_v50 }
 0x149   :  { %1231 = vmatpush1.bf16.msra.mxu1 %v1647_v49  ;;  %v330_v49 = vunpack.c.l.s4 %v1759_v48  ;;  %v1702_v48 = vld [vmem:[%s2257_s3 + $0x1d0] ss:$28 sps:$4 sm:$0xff]  }
 0x14a   :  { %1232 = vmatprep.subr.bf16.mxu1 %v1655_v52 }
 0x14b   :  { %v331_v50 = vunpack.c.0.s8 %v330_v49  ;;  %v1707_v49 = vld [vmem:[%s2257_s3 + $0x20c] ss:$28 sps:$4 sm:$0xff]  }
 0x14d   :  { %1233 = vmatpush1.bf16.msra.mxu1 %v1653_v54  ;;  %v334_v52 = vsub.s32 %v331_v50, %v2061_v62  ;;  %v1705_v50 = vld [vmem:[%s2257_s3 + $0x208] ss:$28 sps:$4 sm:$0xff]  }
 0x14e   :  { %1234 = vmatprep.subr.bf16.mxu1 %v1661_v56  ;;  %v1372_v56 = vld [vmem:[%s2258_s4 + $0x4] ss:$8 sm:$0x3] }
 0x151   :  { %1235 = vmatpush1.bf16.msra.mxu1 %v1659_v58 }
 0x152   :  { %1499 = vmatprep.subr.bf16.mxu1 %v1665_v60 }
 0x1e7   :  { %v277_v4 = vpop.f32.mrb[0].mxu1 }
 0x1e8   :  { %v278_v5 = vadd.f32 %v277_v4, %v156_v2  ;;  %v279_v6 = vpop.f32.mrb[1].mxu1 }
 0x1e9   :  { %v280_v7 = vadd.f32 %v279_v6, %v160_v3  ;;  %v281_v8 = vpop.f32.mrb[2].mxu1 }
 0x1ea   :  { %v284_v9 = vrot.slane %v278_v5, 4  ;;  %v298_v10 = vmul.f32 %v278_v5, %v278_v5  ;;  %v282_v11 = vpop.f32.mrb[3].mxu1  ;;  %v1373_v8 = vld [vmem:[%s2258_s4 + $0x5] ss:$8 sm:$0x3] }
 0x1eb   :  { %v290_v12 = vrot.slane %v280_v7, 4  ;;  %v299_v13 = vmul.f32 %v280_v7, %v280_v7 }
 0x1ec   :  { %v285_v14 = vadd.f32 %v284_v9, %v278_v5  ;;  %v300_v15 = vrot.slane %v298_v10, 4 }
 0x1ed   :  { %v291_v16 = vadd.f32 %v290_v12, %v280_v7  ;;  %v306_v17 = vrot.slane %v299_v13, 4 }
 0x1ee   :  { %v286_v18 = vrot.slane %v285_v14, 2  ;;  %v301_v19 = vadd.f32 %v300_v15, %v298_v10 }
 0x1ef   :  { %v292_v20 = vrot.slane %v291_v16, 2  ;;  %v307_v21 = vadd.f32 %v306_v17, %v299_v13 }
 0x1f0   :  { %v287_v22 = vadd.f32 %v286_v18, %v285_v14  ;;  %v302_v23 = vrot.slane %v301_v19, 2  ;;  %v1666_v18 = vld [vmem:[%s2257_s3 + $0x18] ss:$28 sps:$4 sm:$0xff]  }
 0x1f1   :  { %v293_v24 = vadd.f32 %v292_v20, %v291_v16  ;;  %v308_v25 = vrot.slane %v307_v21, 2  ;;  %v1670_v20 = vld [vmem:[%s2257_s3 + $0x210] ss:$28 sps:$4 sm:$0xff]  }
 0x1f2   :  { %v288_v26 = vrot.slane %v287_v22, 1  ;;  %v303_v27 = vadd.f32 %v302_v23, %v301_v19  ;;  %v1669_v19 = vld [vmem:[%s2257_s3 + $0x4c] ss:$28 sps:$4 sm:$0xff]   ;;  %v1674_v23 = vld [vmem:[%s2257_s3 + $0x84] ss:$28 sps:$4 sm:$0xff]  }
 0x1f3   :  { %v294_v28 = vrot.slane %v293_v24, 1  ;;  %v309_v29 = vadd.f32 %v308_v25, %v307_v21  ;;  %v1667_v21 = vld [vmem:[%s2257_s3 + $0x48] ss:$28 sps:$4 sm:$0xff]   ;;  %v1672_v25 = vld [vmem:[%s2257_s3 + $0x80] ss:$28 sps:$4 sm:$0xff]  }
 0x1f4   :  { %v289_v30 = vadd.f32 %v288_v26, %v287_v22  ;;  %v304_v31 = vrot.slane %v303_v27, 1  ;;  %v1671_v22 = vld [vmem:[%s2257_s3 + $0x50] ss:$28 sps:$4 sm:$0xff]   ;;  %v1676_v26 = vld [vmem:[%s2257_s3 + $0x88] ss:$28 sps:$4 sm:$0xff]  }
 0x1f5   :  { %v295_v32 = vadd.f32 %v294_v28, %v293_v24  ;;  %v310_v33 = vrot.slane %v309_v29, 1  ;;  %v1675_v24 = vld [vmem:[%s2257_s3 + $0x248] ss:$28 sps:$4 sm:$0xff]   ;;  %v1680_v28 = vld [vmem:[%s2257_s3 + $0x280] ss:$28 sps:$4 sm:$0xff]  }
 0x1f6   :  { %v296_v34 = vmul.f32 0.125, %v289_v30  ;;  %v305_v35 = vadd.f32 %v304_v31, %v303_v27  ;;  %v1679_v27 = vld [vmem:[%s2257_s3 + $0xbc] ss:$28 sps:$4 sm:$0xff]   ;;  %v1684_v31 = vld [vmem:[%s2257_s3 + $0xf4] ss:$28 sps:$4 sm:$0xff]  }
 0x1f7   :  { %v297_v36 = vmul.f32 0.125, %v295_v32  ;;  %v311_v37 = vadd.f32 %v310_v33, %v309_v29  ;;  %v1677_v29 = vld [vmem:[%s2257_s3 + $0xb8] ss:$28 sps:$4 sm:$0xff]   ;;  %v1681_v30 = vld [vmem:[%s2257_s3 + $0xc0] ss:$28 sps:$4 sm:$0xff]  }
 0x1f8   :  { %v312_v38 = vmul.f32 0.125, %v305_v35  ;;  %v314_v39 = vmul.f32 %v296_v34, %v296_v34  ;;  %v1685_v32 = vld [vmem:[%s2257_s3 + $0x2b8] ss:$28 sps:$4 sm:$0xff]   ;;  %v1682_v33 = vld [vmem:[%s2257_s3 + $0xf0] ss:$28 sps:$4 sm:$0xff]  }
 0x1f9   :  { %v313_v40 = vmul.f32 0.125, %v311_v37  ;;  %v315_v41 = vmul.f32 %v297_v36, %v297_v36  ;;  %v1689_v35 = vld [vmem:[%s2257_s3 + $0x12c] ss:$28 sps:$4 sm:$0xff]  }
 0x1fa   :  { %v316_v42 = vsub.f32 %v312_v38, %v314_v39  ;;  %v1687_v37 = vld [vmem:[%s2257_s3 + $0x128] ss:$28 sps:$4 sm:$0xff]   ;;  %v1691_v38 = vld [vmem:[%s2257_s3 + $0x130] ss:$28 sps:$4 sm:$0xff]  }
 0x1fb   :  { %v317_v43 = vsub.f32 %v313_v40, %v315_v41  ;;  %v1694_v39 = vld [vmem:[%s2257_s3 + $0x164] ss:$28 sps:$4 sm:$0xff]  }
 0x1fc   :  { %v318_v44 = vmax.f32 %v316_v42, 0.0  ;;  %v1695_v40 = vld [vmem:[%s2257_s3 + $0x328] ss:$28 sps:$4 sm:$0xff]   ;;  %v1692_v41 = vld [vmem:[%s2257_s3 + $0x160] ss:$28 sps:$4 sm:$0xff]  }
 0x1fd   :  { %v319_v45 = vmax.f32 %v317_v43, 0.0  ;;  %v1696_v42 = vld [vmem:[%s2257_s3 + $0x168] ss:$28 sps:$4 sm:$0xff]   ;;  %v1699_v43 = vld [vmem:[%s2257_s3 + $0x19c] ss:$28 sps:$4 sm:$0xff]  }
 0x1fe   :  { %v322_v46 = vadd.f32 1e-05, %v318_v44  ;;  %v1700_v44 = vld [vmem:[%s2257_s3 + $0x360] ss:$28 sps:$4 sm:$0xff]  }
 0x1ff   :  { %v323_v47 = vadd.f32 1e-05, %v319_v45  ;;  %v1697_v45 = vld [vmem:[%s2257_s3 + $0x198] ss:$28 sps:$4 sm:$0xff]  }
 0x200   :  { %1728 = vrsqrt.f32 %v322_v46  ;;  %v1701_v46 = vld [vmem:[%s2257_s3 + $0x1a0] ss:$28 sps:$4 sm:$0xff]  }
 0x201   :  { %1730 = vrsqrt.f32 %v323_v47  ;;  %v1704_v47 = vld [vmem:[%s2257_s3 + $0x1d4] ss:$28 sps:$4 sm:$0xff]  }
 0x20a   :  { %v1729_v51 = vpop.eup %1728 }
 0x20b   :  { %v1731_v53 = vpop.eup %1730 }
 0x20c   :  { %v328_v54 = vcombine.low %v1729_v51, %v1731_v53  ;;  %v1710_v51 = vld [vmem:[%s2257_s3 + $0x244] ss:$28 sps:$4 sm:$0xff]   ;;  %v1713_v53 = vld [vmem:[%s2257_s3 + $0x27c] ss:$28 sps:$4 sm:$0xff]  }
 0x20e   :  { %v335_v55 = vrot.slane %v328_v54, %v334_v52  ;;  %v1711_v54 = vld [vmem:[%s2257_s3 + $0x278] ss:$28 sps:$4 sm:$0xff]  }
 0x210   :  { %v342_v57 = vrot.slane %v335_v55, %v334_v52  ;;  %v1716_v55 = vld [vmem:[%s2257_s3 + $0x2b4] ss:$28 sps:$4 sm:$0xff]  }
 0x212   :  { %v344_v58 = vmul.f32 %v1372_v56, %v342_v57  ;;  %v1714_v56 = vld [vmem:[%s2257_s3 + $0x2b0] ss:$28 sps:$4 sm:$0xff]  }
 0x213   :  { %v1719_v57 = vld [vmem:[%s2257_s3 + $0x2ec] ss:$28 sps:$4 sm:$0xff]  }
 0x214   :  { %v351_v59 = vrot.slane %v344_v58, %v2064_v63  ;;  %v355_v60 = vrot.slane %v344_v58, %v2070_v1  ;;  %v1717_v58 = vld [vmem:[%s2257_s3 + $0x2e8] ss:$28 sps:$4 sm:$0xff]  }
 0x216   :  { %v358_v61 = vmul.f32 %v351_v59, %v296_v34  ;;  %v359_v0 = vmul.f32 %v355_v60, %v297_v36  ;;  %v380_v2 = vmul.f32 %v355_v60, %v280_v7  ;;  %v379_v3 = vmul.f32 %v351_v59, %v278_v5  ;;  %v1662_v5 = vld [vmem:[%s2257_s3 + $0x10] ss:$28 sps:$4 sm:$0xff]   ;;  %v1686_v34 = vld [vmem:[%s2257_s3 + $0xf8] ss:$28 sps:$4 sm:$0xff]   ;;  %v1722_v59 = vld [vmem:[%s2257_s3 + $0x324] ss:$28 sps:$4 sm:$0xff]  }
 0x217   :  { %v1690_v36 = vld [vmem:[%s2257_s3 + $0x2f0] ss:$28 sps:$4 sm:$0xff]   ;;  %v1720_v60 = vld [vmem:[%s2257_s3 + $0x320] ss:$28 sps:$4 sm:$0xff]  }
 0x218   :  { %v362_v4 = vcombine.low %v358_v61, %v359_v0  ;;  %v1725_v61 = vld [vmem:[%s2257_s3 + $0x35c] ss:$28 sps:$4 sm:$0xff]  }
 0x219   :  { %v1723_v0 = vld [vmem:[%s2257_s3 + $0x358] ss:$28 sps:$4 sm:$0xff]  }
 0x21a   :  { %v369_v6 = vrot.slane %v362_v4, %v334_v52 }
 0x21c   :  { %v376_v9 = vrot.slane %v369_v6, %v334_v52  ;;  %v1708_v52 = vld [vmem:[%s2257_s3 + $0x240] ss:$28 sps:$4 sm:$0xff]   ;;  %v555_v6 = vsub.s32 2, %v2061_v62  ;;  %s1760_s3 = smov [#allocation3]  }
 0x21e   :  { %v378_v10 = vsub.f32 %v1373_v8, %v376_v9  ;;  %v559_v8 = vsub.s32 3, %v2061_v62 }
 0x220   :  { %v389_v11 = vrot.slane %v378_v10, %v2070_v1  ;;  %v385_v12 = vrot.slane %v378_v10, %v2064_v63 }
 0x222   :  { %v393_v13 = vadd.f32 %v389_v11, %v380_v2  ;;  %v392_v14 = vadd.f32 %v385_v12, %v379_v3  ;;  %v1375_v2 = vld [vmem:[%s2258_s4 + $0x6] ss:$8 sm:$0xf] }
 0x223   :  { %v1376_v3 = vld [vmem:[%s2258_s4 + $0x6] ss:$8 sm:$0x70]  ;;  %s1340_s4 = sshll.u32 %s1760_s3, 4  ;;  %s1341_s4 = int_to_ptr.vmem [resolvable:$true] %s1340_s4 }
 0x224   :  { %v395_v15 = vmax.f32 %v393_v13, 0.0  ;;  %v394_v16 = vmax.f32 %v392_v14, 0.0  ;;  %v543_v4 = vor.u32 %v1376_v3, %v1375_v2  ;;  %s1732_s21 = scalar_lea.vmem %s1341_s4, 896  ;;  %p1737_p1 = scmp.lt.s32.totalorder %s1341_s4, %s1341_s4 }
 0x225   :  { %p1733_p0 = scmp.ne.s32.totalorder %s1341_s4, %s1732_s21  ;;  %p1738_p2 = scmp.lt.s32.totalorder %s1732_s21, %s1732_s21 }
 0x226   :  { %v1493_v17 = vpack.c.bf16 %v395_v15, %v395_v15  ;;  %v2088_v7 = vpack.c.bf16 %v394_v16, %v394_v16  ;;  %v548_v9 = vrot.slane %v543_v4, %v2064_v63  ;;  %v556_v10 = vrot.slane %v543_v4, %v555_v6 }
 0x227   :  { %v552_v11 = vrot.slane %v543_v4, %v2070_v1  ;;  %v560_v12 = vrot.slane %v543_v4, %v559_v8  ;;  %v571_v63 = vsub.s32 6, %v2061_v62  ;;  %p1739_p3 = por %p1738_p2, %p1737_p1 }
 0x228   :  { %1195 = vmatprep.mubr.bf16.mxu0 %v1493_v17  ;;  %1236 = vmatprep.mubr.bf16.mxu1 %v1493_v17 }
 0x229   :  { %1196 = vmatmul.mubr.bf16.vlgmr.msra.gmra.mrb[4].mxu0 %v2088_v7  ;;  %1237 = vmatmul.mubr.bf16.vlgmr.msra.gmra.mrb[4].mxu1 %v2088_v7  ;;  %p1740_p4 = pnand %p1739_p3, %p1733_p0 }
 0x22a   :  { %1246 = vmatpush1.bf16.msra.mxu0 %v1662_v5  ;;  %1500 = vmatpush3.bf16.msra.mxu1 %v1666_v18 }
 0x22b   :  { %1277 = vmatprep.mubr.bf16.mxu0 %v1493_v17  ;;  %1318 = vmatprep.mubr.bf16.mxu1 %v1493_v17 }
 0x22c   :  { %1247 = vmatprep.subr.bf16.mxu0 %v1669_v19  ;;  %1501 = vmatprep.subr.bf16.mxu1 %v1670_v20 }
 0x22e   :  { %1248 = vmatpush1.bf16.msra.mxu0 %v1667_v21  ;;  %1502 = vmatpush3.bf16.msra.mxu1 %v1671_v22 }
 0x22f   :  { %1249 = vmatprep.subr.bf16.mxu0 %v1674_v23  ;;  %1503 = vmatprep.subr.bf16.mxu1 %v1675_v24  ;;  %v572_v23 = vrot.slane %v543_v4, %v571_v63 }
 0x232   :  { %1250 = vmatpush1.bf16.msra.mxu0 %v1672_v25  ;;  %1504 = vmatpush3.bf16.msra.mxu1 %v1676_v26 }
 0x233   :  { %1251 = vmatprep.subr.bf16.mxu0 %v1679_v27  ;;  %1505 = vmatprep.subr.bf16.mxu1 %v1680_v28 }
 0x236   :  { %1252 = vmatpush1.bf16.msra.mxu0 %v1677_v29  ;;  %1506 = vmatpush3.bf16.msra.mxu1 %v1681_v30  ;;  %v563_v29 = vsub.s32 4, %v2061_v62  ;;  %v567_v30 = vsub.s32 5, %v2061_v62 }
 0x237   :  { %1253 = vmatprep.subr.bf16.mxu0 %v1684_v31  ;;  %1507 = vmatprep.subr.bf16.mxu1 %v1685_v32 }
 0x238   :  { %v564_v31 = vrot.slane %v543_v4, %v563_v29  ;;  %v568_v32 = vrot.slane %v543_v4, %v567_v30 }
 0x23a   :  { %1254 = vmatpush1.bf16.msra.mxu0 %v1682_v33  ;;  %1508 = vmatpush3.bf16.msra.mxu1 %v1686_v34 }
 0x23b   :  { %1255 = vmatprep.subr.bf16.mxu0 %v1689_v35  ;;  %1509 = vmatprep.subr.bf16.mxu1 %v1690_v36 }
 0x23e   :  { %1256 = vmatpush1.bf16.msra.mxu0 %v1687_v37  ;;  %1510 = vmatpush3.bf16.msra.mxu1 %v1691_v38 }
 0x23f   :  { %1257 = vmatprep.subr.bf16.mxu0 %v1694_v39  ;;  %1511 = vmatprep.subr.bf16.mxu1 %v1695_v40 }
 0x242   :  { %1258 = vmatpush1.bf16.msra.mxu0 %v1692_v41  ;;  %1512 = vmatpush3.bf16.msra.mxu1 %v1696_v42 }
 0x243   :  { %1259 = vmatprep.subr.bf16.mxu0 %v1699_v43  ;;  %1513 = vmatprep.subr.bf16.mxu1 %v1700_v44 }
 0x246   :  { %1260 = vmatpush1.bf16.msra.mxu0 %v1697_v45  ;;  %1514 = vmatpush3.bf16.msra.mxu1 %v1701_v46 }
 0x247   :  { %1261 = vmatprep.subr.bf16.mxu0 %v1704_v47 }
 0x249   :  { %1319 = vmatmul.mubr.bf16.vlgmr.msra.gmra.mrb[8].mxu1 %v2088_v7 }
 0x24a   :  { %1262 = vmatpush1.bf16.msra.mxu0 %v1702_v48 }
 0x24b   :  { %1263 = vmatprep.subr.bf16.mxu0 %v1707_v49 }
 0x24e   :  { %1264 = vmatpush1.bf16.msra.mxu0 %v1705_v50 }
 0x24f   :  { %1265 = vmatprep.subr.bf16.mxu0 %v1710_v51 }
 0x252   :  { %1266 = vmatpush1.bf16.msra.mxu0 %v1708_v52 }
 0x253   :  { %1267 = vmatprep.subr.bf16.mxu0 %v1713_v53 }
 0x256   :  { %1268 = vmatpush1.bf16.msra.mxu0 %v1711_v54 }
 0x257   :  { %1269 = vmatprep.subr.bf16.mxu0 %v1716_v55 }
 0x25a   :  { %1270 = vmatpush1.bf16.msra.mxu0 %v1714_v56 }
 0x25b   :  { %1271 = vmatprep.subr.bf16.mxu0 %v1719_v57 }
 0x25e   :  { %1272 = vmatpush1.bf16.msra.mxu0 %v1717_v58 }
 0x25f   :  { %1273 = vmatprep.subr.bf16.mxu0 %v1722_v59 }
 0x262   :  { %1274 = vmatpush1.bf16.msra.mxu0 %v1720_v60 }
 0x263   :  { %1275 = vmatprep.subr.bf16.mxu0 %v1725_v61 }
 0x266   :  { %1276 = vmatpush1.bf16.msra.mxu0 %v1723_v0 }
 0x269   :  { %1278 = vmatmul.mubr.bf16.vlgmr.msra.gmra.mrb[8].mxu0 %v2088_v7 }
 0x2fc   :  { %v1197_v13 = vpop.f32.mrb[4].mxu0  ;;  %v1238_v14 = vpop.f32.mrb[4].mxu1 }
 0x2fd   :  { %v1198_v15 = vadd.f32 %v1197_v13, %v548_v9  ;;  %v1239_v16 = vadd.f32 %v1238_v14, %v556_v10  ;;  %v1199_v17 = vpop.f32.mrb[5].mxu0  ;;  %v1240_v5 = vpop.f32.mrb[5].mxu1 }
 0x2fe   :  { %v1200_v7 = vadd.f32 %v1199_v17, %v552_v11  ;;  %v1241_v18 = vadd.f32 %v1240_v5, %v560_v12  ;;  %v1201_v19 = vpop.f32.mrb[6].mxu0  ;;  %v1242_v20 = vpop.f32.mrb[6].mxu1 }
 0x2ff   :  { %1326 = vst [vmem:[#allocation3] sm:$0xff] %v1198_v15  ;;  %1328 = vst [vmem:[#allocation3 + $0x10] sm:$0xff] %v1239_v16  ;;  %v1202_v21 = vpop.f32.mrb[7].mxu0  ;;  %v1243_v22 = vpop.f32.mrb[7].mxu1 }
 0x300   :  { %1327 = vst [vmem:[#allocation3 + $0x8] sm:$0xff] %v1200_v7  ;;  %1329 = vst [vmem:[#allocation3 + $0x18] sm:$0xff] %v1241_v18 }
 0x31c   :  { %v1515_v1 = vpop.f32.mrb[8].mxu1 }
 0x31d   :  { %v1516_v24 = vpop.f32.mrb[9].mxu1 }
 0x31e   :  { %v1517_v25 = vadd.f32 %v1516_v24, %v1515_v1  ;;  %v1518_v26 = vpop.f32.mrb[10].mxu1 }
 0x31f   :  { %v1519_v27 = vpop.f32.mrb[11].mxu1 }
 0x320   :  { %v1321_v28 = vadd.f32 %v1517_v25, %v572_v23 }
 0x322   :  { %1333 = vst.msk [vmem:[#allocation3 + $0x30] sm:$0xff] %vm1332_vm2, %v1321_v28 }
 0x33c   :  { %v1279_v33 = vpop.f32.mrb[8].mxu0 }
 0x33d   :  { %v1280_v34 = vadd.f32 %v1279_v33, %v564_v31  ;;  %v1281_v35 = vpop.f32.mrb[9].mxu0 }
 0x33e   :  { %v1282_v36 = vadd.f32 %v1281_v35, %v568_v32  ;;  %v1283_v37 = vpop.f32.mrb[10].mxu0 }
 0x33f   :  { %1330 = vst [vmem:[#allocation3 + $0x20] sm:$0xff] %v1280_v34  ;;  %v1284_v38 = vpop.f32.mrb[11].mxu0 }
 0x340   :  { %1331 = vst [vmem:[#allocation3 + $0x28] sm:$0xff] %v1282_v36 }
 0x341   :  { %1743 = shalt.err (!%p1740_p4)
}
 0x342   :  { %s1744_s24 = scalar_lea.hbm %s2259_s5, 896 }
 0x343   :  { %p1745_p5 = scmp.ne.s32.totalorder %s2259_s5, %s1744_s24  ;;  %p1748_p6 = scmp.lt.u32.totalorder %s1744_s24, %s2259_s5 }
 0x345   :  { %p1750_p7 = pnand %p1748_p6, %p1745_p5 }
 0x347   :  { %1753 = shalt.err (!%p1750_p7)
}
 0x348   :  { %1343 = dma.vmem_to_hbm [thread:$0]  %s1341_s4, 896, %s2259_s5, [#allocation4]  }
 0x349   :  { %1754 = dma.done.wait [#allocation4], 896  }
 0x34a   :  { %1755 = vsyncadd [#allocation4], 4294966400 }
 0x34b   :  { %1347 = vsyncpa [#allocation4], 1 }

</bundles_post_ra>
